<compile_context>
chip_gen: v5e
topology: v5e:2x2
jax: 0.10.0
libtpu: 0.0.40
codegen_flags: <defaults>
</compile_context>

<pallas_src>
import functools

import jax
import jax.numpy as jnp
from jax.experimental import pallas as pl
from jax.experimental.pallas import tpu as pltpu


_SQRT_HALF = 0.7071067811865476


def _erf_approx(x):
    """Abramowitz & Stegun 7.1.26 rational erf approximation (|err| <= 1.5e-7)."""
    ax = jnp.abs(x)
    t = 1.0 / (1.0 + 0.3275911 * ax)
    poly = t * (0.254829592
                + t * (-0.284496736
                       + t * (1.421413741
                              + t * (-1.453152027 + t * 1.061405429))))
    y = 1.0 - poly * jnp.exp(-ax * ax)
    return jnp.where(x < 0, -y, y)


def _gelu_exact(x):
    # PyTorch nn.GELU() default (approximate='none'): 0.5 * x * (1 + erf(x/sqrt(2)))
    return 0.5 * x * (1.0 + _erf_approx(x * _SQRT_HALF))


def _layernorm(x, gamma, beta, eps=1e-5):
    # PyTorch nn.LayerNorm: biased variance, eps inside the sqrt, affine params.
    mu = jnp.mean(x, axis=-1, keepdims=True)
    xc = x - mu
    var = jnp.mean(xc * xc, axis=-1, keepdims=True)
    return xc * jax.lax.rsqrt(var + eps) * gamma + beta


def _block_kernel(x_ref, g1_ref, b1_ref, wqkv_ref, wproj_ref, bproj_ref,
                  g2_ref, b2_ref, wfc1_ref, bfc1_ref, wfc2_ref, bfc2_ref,
                  o_ref, *, num_heads: int, compute_dtype):
    Bb, N, C = x_ref.shape
    head_dim = C // num_heads
    scale = head_dim ** (-0.5)

    # Residual stream in fp32, flattened to a (Bb*N, C) slab for the big matmuls.
    x2 = x_ref[...].reshape(Bb * N, C).astype(jnp.float32)

    # ---------------- LayerNorm 1 + multi-head self-attention ----------------
    xn = _layernorm(x2, g1_ref[...], b1_ref[...])
    xn_c = xn.astype(compute_dtype)

    # Fused QKV as three dedicated MXU matmuls (weights pre-shaped (3, C, C) in
    # the wrapper) -> no lane-axis slicing of a (.., 3C) qkv tensor.
    q2 = jnp.dot(xn_c, wqkv_ref[0], preferred_element_type=jnp.float32)
    k2 = jnp.dot(xn_c, wqkv_ref[1], preferred_element_type=jnp.float32)
    v2 = jnp.dot(xn_c, wqkv_ref[2], preferred_element_type=jnp.float32)

    q3 = q2.reshape(Bb, N, C).astype(compute_dtype)
    k3 = k2.reshape(Bb, N, C).astype(compute_dtype)
    v3 = v2.reshape(Bb, N, C).astype(compute_dtype)

    head_out = []
    for h in range(num_heads):   # small static loop; matmuls batched over Bb
        sl = slice(h * head_dim, (h + 1) * head_dim)
        s = jnp.einsum('bqd,bkd->bqk', q3[:, :, sl], k3[:, :, sl],
                       preferred_element_type=jnp.float32) * scale
        # Numerically stable softmax (fp32); attn_drop p=0 -> identity.
        s = s - jnp.max(s, axis=-1, keepdims=True)
        p = jnp.exp(s)
        p = p * pl.reciprocal(jnp.sum(p, axis=-1, keepdims=True), approx=True)
        head_out.append(jnp.einsum('bqk,bkd->bqd', p.astype(compute_dtype),
                                   v3[:, :, sl],
                                   preferred_element_type=jnp.float32))
    ctx = jnp.concatenate(head_out, axis=-1)            # (Bb, N, C), fp32

    ctx2 = ctx.reshape(Bb * N, C).astype(compute_dtype)
    attn_out = jnp.dot(ctx2, wproj_ref[...],
                       preferred_element_type=jnp.float32) + bproj_ref[...]

    xr1 = x2 + attn_out                                  # residual 1 (fp32)

    # ---------------------- LayerNorm 2 + MLP (GELU) -------------------------
    yn = _layernorm(xr1, g2_ref[...], b2_ref[...]).astype(compute_dtype)
    h1 = jnp.dot(yn, wfc1_ref[...],
                 preferred_element_type=jnp.float32) + bfc1_ref[...]
    h1 = _gelu_exact(h1)
    y2 = jnp.dot(h1.astype(compute_dtype), wfc2_ref[...],
                 preferred_element_type=jnp.float32) + bfc2_ref[...]

    out = xr1 + y2                                       # residual 2 (fp32)
    o_ref[...] = out.reshape(Bb, N, C).astype(o_ref.dtype)


def block_forward(x, ln1_g, ln1_b, w_qkv, w_proj, b_proj, ln2_g, ln2_b,
                  w_fc1, b_fc1, w_fc2, b_fc2, *, num_heads: int,
                  batch_block=None, compute_dtype=jnp.bfloat16):
    """Forward pass of `Block`.

    x: (B, N, C).  Weights in PyTorch nn.Linear layout: w_qkv (3C, C) (no bias,
    module default qkv_bias=False), w_proj (C, C) + b_proj (C,),
    w_fc1 (Hm, C) + b_fc1 (Hm,), w_fc2 (C, Hm) + b_fc2 (C,).
    LayerNorm params ln*_g / ln*_b: (C,).
    """
    B, N, C = x.shape
    assert C % num_heads == 0
    Hm = w_fc1.shape[0]

    if batch_block is None:
        # Fold the whole batch into one grid step (best on single-TC v5e/v6e).
        # On v7x pass batch_block=B//2 so the 2-way "parallel" grid feeds both TCs.
        batch_block = B
    assert B % batch_block == 0
    grid = (B // batch_block,)

    f32 = jnp.float32
    # nn.Linear stores W as (out, in); pre-transpose so the kernel does y = x @ W.
    # MXU-operand weights are stored in compute_dtype (bf16 on v6e/v7x) to halve
    # their DMA bytes / VMEM footprint; biases & LN params stay fp32.
    wqkv3 = jnp.transpose(jnp.asarray(w_qkv, f32).reshape(3, C, C),
                          (0, 2, 1)).astype(compute_dtype)          # (3, C, C)
    wproj_t = jnp.asarray(w_proj, f32).T.astype(compute_dtype)      # (C, C)
    wfc1_t = jnp.asarray(w_fc1, f32).T.astype(compute_dtype)        # (C, Hm)
    wfc2_t = jnp.asarray(w_fc2, f32).T.astype(compute_dtype)        # (Hm, C)

    ln1_g2 = jnp.asarray(ln1_g, f32).reshape(1, C)
    ln1_b2 = jnp.asarray(ln1_b, f32).reshape(1, C)
    ln2_g2 = jnp.asarray(ln2_g, f32).reshape(1, C)
    ln2_b2 = jnp.asarray(ln2_b, f32).reshape(1, C)
    bproj2 = jnp.asarray(b_proj, f32).reshape(1, C)
    bfc1_2 = jnp.asarray(b_fc1, f32).reshape(1, Hm)
    bfc2_2 = jnp.asarray(b_fc2, f32).reshape(1, C)

    kernel = functools.partial(_block_kernel, num_heads=num_heads,
                               compute_dtype=compute_dtype)

    x_map = lambda b: (b, 0, 0)
    const2 = lambda b: (0, 0)
    const3 = lambda b: (0, 0, 0)

    return pl.pallas_call(
        kernel,
        out_shape=jax.ShapeDtypeStruct((B, N, C), x.dtype),
        grid_spec=pltpu.PrefetchScalarGridSpec(
            num_scalar_prefetch=0,
            grid=grid,
            in_specs=[
                pl.BlockSpec((batch_block, N, C), x_map),   # x
                pl.BlockSpec((1, C), const2),               # ln1 gamma
                pl.BlockSpec((1, C), const2),               # ln1 beta
                pl.BlockSpec((3, C, C), const3),            # qkv weights (in,out)
                pl.BlockSpec((C, C), const2),               # proj weight
                pl.BlockSpec((1, C), const2),               # proj bias
                pl.BlockSpec((1, C), const2),               # ln2 gamma
                pl.BlockSpec((1, C), const2),               # ln2 beta
                pl.BlockSpec((C, Hm), const2),              # fc1 weight
                pl.BlockSpec((1, Hm), const2),              # fc1 bias
                pl.BlockSpec((Hm, C), const2),              # fc2 weight
                pl.BlockSpec((1, C), const2),               # fc2 bias
            ],
            out_specs=pl.BlockSpec((batch_block, N, C), x_map),
        ),
        compiler_params=pltpu.CompilerParams(
            dimension_semantics=("parallel",),
            # Explicit VMEM budget (matters at production C~768, esp. on v7x).
            vmem_limit_bytes=32 * 1024 * 1024,
        ),
    )(x, ln1_g2, ln1_b2, wqkv3, wproj_t, bproj2, ln2_g2, ln2_b2,
      wfc1_t, bfc1_2, wfc2_t, bfc2_2)


def block_reference(x, ln1_g, ln1_b, w_qkv, w_proj, b_proj, ln2_g, ln2_b,
                    w_fc1, b_fc1, w_fc2, b_fc2, *, num_heads: int):
    """Pure-JAX fp32 reference mirroring the PyTorch Block.forward."""
    B, N, C = x.shape
    hd = C // num_heads
    scale = hd ** (-0.5)

    def ln(z, g, b, eps=1e-5):
        mu = z.mean(-1, keepdims=True)
        var = ((z - mu) ** 2).mean(-1, keepdims=True)
        return (z - mu) / jnp.sqrt(var + eps) * g + b

    # Attention branch
    xn = ln(x, ln1_g, ln1_b)
    qkv = jnp.einsum('bnc,oc->bno', xn, w_qkv)                      # (B, N, 3C)
    qkv = qkv.reshape(B, N, 3, num_heads, hd).transpose(2, 0, 3, 1, 4)
    q, k, v = qkv[0], qkv[1], qkv[2]
    attn = jnp.einsum('bhqd,bhkd->bhqk', q, k) * scale
    attn = jax.nn.softmax(attn, axis=-1)
    ctx = jnp.einsum('bhqk,bhkd->bhqd', attn, v)
    ctx = ctx.transpose(0, 2, 1, 3).reshape(B, N, C)
    x = x + (jnp.einsum('bnc,oc->bno', ctx, w_proj) + b_proj)

    # MLP branch
    yn = ln(x, ln2_g, ln2_b)
    h = jnp.einsum('bnc,hc->bnh', yn, w_fc1) + b_fc1
    h = jax.nn.gelu(h, approximate=False)                           # exact GELU
    y = jnp.einsum('bnh,ch->bnc', h, w_fc2) + b_fc2
    return x + y


if __name__ == "__main__":
    # Small shapes consistent with the module: B=2, N=8, C=32, heads=4, mlp=4*C.
    B, N, C = 2, 8, 32
    num_heads = 4
    mlp_hidden = 4 * C   # mlp_ratio = 4.0

    key = jax.random.PRNGKey(0)
    ks = jax.random.split(key, 12)

    x = jax.random.normal(ks[0], (B, N, C), dtype=jnp.float32)

    ln1_g = 1.0 + 0.1 * jax.random.normal(ks[1], (C,), dtype=jnp.float32)
    ln1_b = 0.1 * jax.random.normal(ks[2], (C,), dtype=jnp.float32)
    ln2_g = 1.0 + 0.1 * jax.random.normal(ks[3], (C,), dtype=jnp.float32)
    ln2_b = 0.1 * jax.random.normal(ks[4], (C,), dtype=jnp.float32)

    # Attention: qkv has no bias (module default qkv_bias=False); proj has bias.
    w_qkv = 0.05 * jax.random.normal(ks[5], (3 * C, C), dtype=jnp.float32)
    w_proj = 0.05 * jax.random.normal(ks[6], (C, C), dtype=jnp.float32)
    b_proj = 0.05 * jax.random.normal(ks[7], (C,), dtype=jnp.float32)

    w_fc1 = 0.05 * jax.random.normal(ks[8], (mlp_hidden, C), dtype=jnp.float32)
    b_fc1 = 0.05 * jax.random.normal(ks[9], (mlp_hidden,), dtype=jnp.float32)
    w_fc2 = 0.05 * jax.random.normal(ks[10], (C, mlp_hidden), dtype=jnp.float32)
    b_fc2 = 0.05 * jax.random.normal(ks[11], (C,), dtype=jnp.float32)

    args = (x, ln1_g, ln1_b, w_qkv, w_proj, b_proj, ln2_g, ln2_b,
            w_fc1, b_fc1, w_fc2, b_fc2)

    ref = block_reference(*args, num_heads=num_heads)

    # fp32-operand path: tight correctness check.
    out_f32 = jax.block_until_ready(
        block_forward(*args, num_heads=num_heads, compute_dtype=jnp.float32))
    assert out_f32.shape == (B, N, C)
    assert jnp.allclose(out_f32, ref, atol=2e-3, rtol=2e-3), (
        f"f32 max abs diff {jnp.max(jnp.abs(out_f32 - ref))}")

    # bf16-operand path (recommended on v6e/v7x): fp32 accumulation, looser check.
    out_bf16 = jax.block_until_ready(
        block_forward(*args, num_heads=num_heads, compute_dtype=jnp.bfloat16))
    assert jnp.allclose(out_bf16, ref, atol=7.5e-2, rtol=7.5e-2), (
        f"bf16 max abs diff {jnp.max(jnp.abs(out_bf16 - ref))}")

    print("KERNEL_OK")
</pallas_src>

<mosaic_0001>
module attributes {stable_mosaic.version = 11 : i64} {
  func.func @_block_kernel(%arg0: i32, %arg1: memref<2x8x32xf32, #tpu.memory_space<vmem>>, %arg2: memref<1x32xf32, #tpu.memory_space<vmem>>, %arg3: memref<1x32xf32, #tpu.memory_space<vmem>>, %arg4: memref<3x32x32xf32, #tpu.memory_space<vmem>>, %arg5: memref<32x32xf32, #tpu.memory_space<vmem>>, %arg6: memref<1x32xf32, #tpu.memory_space<vmem>>, %arg7: memref<1x32xf32, #tpu.memory_space<vmem>>, %arg8: memref<1x32xf32, #tpu.memory_space<vmem>>, %arg9: memref<32x128xf32, #tpu.memory_space<vmem>>, %arg10: memref<1x128xf32, #tpu.memory_space<vmem>>, %arg11: memref<128x32xf32, #tpu.memory_space<vmem>>, %arg12: memref<1x32xf32, #tpu.memory_space<vmem>>, %arg13: memref<2x8x32xf32, #tpu.memory_space<vmem>>) attributes {dimension_semantics = [#tpu.dimension_semantics<parallel>], iteration_bounds = array<i64: 1>, scalar_prefetch = 0 : i64, scratch_operands = 0 : i64, tpu.core_type = #tpu.core_type<tc>, window_params = [{transform_indices = @transform_0, window_bounds = array<i64: 2, 8, 32>}, {pipeline_mode = #tpu.pipeline_mode<synchronous>, transform_indices = @transform_1, window_bounds = array<i64: 1, 32>}, {pipeline_mode = #tpu.pipeline_mode<synchronous>, transform_indices = @transform_2, window_bounds = array<i64: 1, 32>}, {pipeline_mode = #tpu.pipeline_mode<synchronous>, transform_indices = @transform_3, window_bounds = array<i64: 3, 32, 32>}, {pipeline_mode = #tpu.pipeline_mode<synchronous>, transform_indices = @transform_4, window_bounds = array<i64: 32, 32>}, {pipeline_mode = #tpu.pipeline_mode<synchronous>, transform_indices = @transform_5, window_bounds = array<i64: 1, 32>}, {pipeline_mode = #tpu.pipeline_mode<synchronous>, transform_indices = @transform_6, window_bounds = array<i64: 1, 32>}, {pipeline_mode = #tpu.pipeline_mode<synchronous>, transform_indices = @transform_7, window_bounds = array<i64: 1, 32>}, {pipeline_mode = #tpu.pipeline_mode<synchronous>, transform_indices = @transform_8, window_bounds = array<i64: 32, 128>}, {pipeline_mode = #tpu.pipeline_mode<synchronous>, transform_indices = @transform_9, window_bounds = array<i64: 1, 128>}, {pipeline_mode = #tpu.pipeline_mode<synchronous>, transform_indices = @transform_10, window_bounds = array<i64: 128, 32>}, {pipeline_mode = #tpu.pipeline_mode<synchronous>, transform_indices = @transform_11, window_bounds = array<i64: 1, 32>}, {transform_indices = @transform_12, window_bounds = array<i64: 2, 8, 32>}]} {
    %c0 = arith.constant 0 : index
    %c0_0 = arith.constant 0 : index
    %c0_1 = arith.constant 0 : index
    %0 = vector.load %arg1[%c0, %c0_0, %c0_1] : memref<2x8x32xf32, #tpu.memory_space<vmem>>, vector<2x8x32xf32>
    %1 = vector.shape_cast %0 : vector<2x8x32xf32> to vector<16x32xf32>
    %c0_2 = arith.constant 0 : index
    %c0_3 = arith.constant 0 : index
    %2 = vector.load %arg2[%c0_2, %c0_3] : memref<1x32xf32, #tpu.memory_space<vmem>>, vector<1x32xf32>
    %c0_4 = arith.constant 0 : index
    %c0_5 = arith.constant 0 : index
    %3 = vector.load %arg3[%c0_4, %c0_5] : memref<1x32xf32, #tpu.memory_space<vmem>>, vector<1x32xf32>
    %cst = arith.constant dense<0.000000e+00> : vector<16xf32>
    %4 = vector.multi_reduction <add>, %1, %cst [1] : vector<16x32xf32> to vector<16xf32>
    %5 = vector.shape_cast %4 : vector<16xf32> to vector<16x1xf32>
    %cst_6 = arith.constant 3.200000e+01 : f32
    %6 = vector.broadcast %cst_6 : f32 to vector<16x1xf32>
    %7 = arith.divf %5, %6 : vector<16x1xf32>
    %8 = vector.broadcast %7 : vector<16x1xf32> to vector<16x32xf32>
    %9 = arith.subf %1, %8 : vector<16x32xf32>
    %10 = arith.mulf %9, %9 : vector<16x32xf32>
    %cst_7 = arith.constant dense<0.000000e+00> : vector<16xf32>
    %11 = vector.multi_reduction <add>, %10, %cst_7 [1] : vector<16x32xf32> to vector<16xf32>
    %12 = vector.shape_cast %11 : vector<16xf32> to vector<16x1xf32>
    %cst_8 = arith.constant 3.200000e+01 : f32
    %13 = vector.broadcast %cst_8 : f32 to vector<16x1xf32>
    %14 = arith.divf %12, %13 : vector<16x1xf32>
    %cst_9 = arith.constant 9.99999974E-6 : f32
    %15 = vector.broadcast %cst_9 : f32 to vector<16x1xf32>
    %16 = arith.addf %14, %15 : vector<16x1xf32>
    %17 = math.rsqrt %16 : vector<16x1xf32>
    %18 = vector.broadcast %17 : vector<16x1xf32> to vector<16x32xf32>
    %19 = arith.mulf %9, %18 : vector<16x32xf32>
    %20 = vector.broadcast %2 : vector<1x32xf32> to vector<16x32xf32>
    %21 = arith.mulf %19, %20 : vector<16x32xf32>
    %22 = vector.broadcast %3 : vector<1x32xf32> to vector<16x32xf32>
    %23 = arith.addf %21, %22 : vector<16x32xf32>
    %c0_10 = arith.constant 0 : index
    %c0_11 = arith.constant 0 : index
    %c0_12 = arith.constant 0 : index
    %24 = vector.load %arg4[%c0_10, %c0_11, %c0_12] : memref<3x32x32xf32, #tpu.memory_space<vmem>>, vector<1x32x32xf32>
    %25 = vector.shape_cast %24 : vector<1x32x32xf32> to vector<32x32xf32>
    %cst_13 = arith.constant dense<0.000000e+00> : vector<16x32xf32>
    %26 = tpu.matmul %23, %25, %cst_13 {dimension_numbers = #tpu.dot_dimension_numbers<[1], [0], [0], [1], [0, 0, 1, 1], [], []>} : vector<16x32xf32>, vector<32x32xf32>, vector<16x32xf32> -> vector<16x32xf32>
    %c1 = arith.constant 1 : index
    %c0_14 = arith.constant 0 : index
    %c0_15 = arith.constant 0 : index
    %27 = vector.load %arg4[%c1, %c0_14, %c0_15] : memref<3x32x32xf32, #tpu.memory_space<vmem>>, vector<1x32x32xf32>
    %28 = vector.shape_cast %27 : vector<1x32x32xf32> to vector<32x32xf32>
    %cst_16 = arith.constant dense<0.000000e+00> : vector<16x32xf32>
    %29 = tpu.matmul %23, %28, %cst_16 {dimension_numbers = #tpu.dot_dimension_numbers<[1], [0], [0], [1], [0, 0, 1, 1], [], []>} : vector<16x32xf32>, vector<32x32xf32>, vector<16x32xf32> -> vector<16x32xf32>
    %c2 = arith.constant 2 : index
    %c0_17 = arith.constant 0 : index
    %c0_18 = arith.constant 0 : index
    %30 = vector.load %arg4[%c2, %c0_17, %c0_18] : memref<3x32x32xf32, #tpu.memory_space<vmem>>, vector<1x32x32xf32>
    %31 = vector.shape_cast %30 : vector<1x32x32xf32> to vector<32x32xf32>
    %cst_19 = arith.constant dense<0.000000e+00> : vector<16x32xf32>
    %32 = tpu.matmul %23, %31, %cst_19 {dimension_numbers = #tpu.dot_dimension_numbers<[1], [0], [0], [1], [0, 0, 1, 1], [], []>} : vector<16x32xf32>, vector<32x32xf32>, vector<16x32xf32> -> vector<16x32xf32>
    %33 = vector.shape_cast %26 : vector<16x32xf32> to vector<2x8x32xf32>
    %34 = vector.shape_cast %29 : vector<16x32xf32> to vector<2x8x32xf32>
    %35 = vector.shape_cast %32 : vector<16x32xf32> to vector<2x8x32xf32>
    %36 = vector.extract_strided_slice %33 {offsets = [0, 0, 0], sizes = [2, 8, 8], strides = [1, 1, 1]} : vector<2x8x32xf32> to vector<2x8x8xf32>
    %37 = vector.extract_strided_slice %34 {offsets = [0, 0, 0], sizes = [2, 8, 8], strides = [1, 1, 1]} : vector<2x8x32xf32> to vector<2x8x8xf32>
    "tpu.trace_start"() <{level = 10 : i32, message = "bqd,bkd->bqk"}> : () -> ()
    %cst_20 = arith.constant dense<0.000000e+00> : vector<2x8x8xf32>
    %38 = tpu.matmul %36, %37, %cst_20 {dimension_numbers = #tpu.dot_dimension_numbers<[2], [2], [1], [1], [0, 0, 0, 1, 1, 1], [0], [0]>} : vector<2x8x8xf32>, vector<2x8x8xf32>, vector<2x8x8xf32> -> vector<2x8x8xf32>
    "tpu.trace_stop"() : () -> ()
    %cst_21 = arith.constant 0.353553385 : f32
    %39 = vector.broadcast %cst_21 : f32 to vector<2x8x8xf32>
    %40 = arith.mulf %38, %39 : vector<2x8x8xf32>
    %cst_22 = arith.constant dense<0xFF800000> : vector<2x8xf32>
    %41 = vector.multi_reduction <maximumf>, %40, %cst_22 [2] : vector<2x8x8xf32> to vector<2x8xf32>
    %42 = vector.shape_cast %41 : vector<2x8xf32> to vector<2x8x1xf32>
    %43 = vector.broadcast %42 : vector<2x8x1xf32> to vector<2x8x8xf32>
    %44 = arith.subf %40, %43 : vector<2x8x8xf32>
    %45 = math.exp %44 : vector<2x8x8xf32>
    %cst_23 = arith.constant dense<0.000000e+00> : vector<2x8xf32>
    %46 = vector.multi_reduction <add>, %45, %cst_23 [2] : vector<2x8x8xf32> to vector<2x8xf32>
    %47 = vector.shape_cast %46 : vector<2x8xf32> to vector<2x8x1xf32>
    %48 = tpu.reciprocal %47 {approx = true} : vector<2x8x1xf32> -> vector<2x8x1xf32>
    %49 = vector.broadcast %48 : vector<2x8x1xf32> to vector<2x8x8xf32>
    %50 = arith.mulf %45, %49 : vector<2x8x8xf32>
    %51 = vector.extract_strided_slice %35 {offsets = [0, 0, 0], sizes = [2, 8, 8], strides = [1, 1, 1]} : vector<2x8x32xf32> to vector<2x8x8xf32>
    "tpu.trace_start"() <{level = 10 : i32, message = "bqk,bkd->bqd"}> : () -> ()
    %cst_24 = arith.constant dense<0.000000e+00> : vector<2x8x8xf32>
    %52 = tpu.matmul %50, %51, %cst_24 {dimension_numbers = #tpu.dot_dimension_numbers<[2], [1], [1], [2], [0, 0, 0, 1, 1, 2], [0], [0]>} : vector<2x8x8xf32>, vector<2x8x8xf32>, vector<2x8x8xf32> -> vector<2x8x8xf32>
    "tpu.trace_stop"() : () -> ()
    %53 = vector.extract_strided_slice %33 {offsets = [0, 0, 8], sizes = [2, 8, 8], strides = [1, 1, 1]} : vector<2x8x32xf32> to vector<2x8x8xf32>
    %54 = vector.extract_strided_slice %34 {offsets = [0, 0, 8], sizes = [2, 8, 8], strides = [1, 1, 1]} : vector<2x8x32xf32> to vector<2x8x8xf32>
    "tpu.trace_start"() <{level = 10 : i32, message = "bqd,bkd->bqk"}> : () -> ()
    %cst_25 = arith.constant dense<0.000000e+00> : vector<2x8x8xf32>
    %55 = tpu.matmul %53, %54, %cst_25 {dimension_numbers = #tpu.dot_dimension_numbers<[2], [2], [1], [1], [0, 0, 0, 1, 1, 1], [0], [0]>} : vector<2x8x8xf32>, vector<2x8x8xf32>, vector<2x8x8xf32> -> vector<2x8x8xf32>
    "tpu.trace_stop"() : () -> ()
    %cst_26 = arith.constant 0.353553385 : f32
    %56 = vector.broadcast %cst_26 : f32 to vector<2x8x8xf32>
    %57 = arith.mulf %55, %56 : vector<2x8x8xf32>
    %cst_27 = arith.constant dense<0xFF800000> : vector<2x8xf32>
    %58 = vector.multi_reduction <maximumf>, %57, %cst_27 [2] : vector<2x8x8xf32> to vector<2x8xf32>
    %59 = vector.shape_cast %58 : vector<2x8xf32> to vector<2x8x1xf32>
    %60 = vector.broadcast %59 : vector<2x8x1xf32> to vector<2x8x8xf32>
    %61 = arith.subf %57, %60 : vector<2x8x8xf32>
    %62 = math.exp %61 : vector<2x8x8xf32>
    %cst_28 = arith.constant dense<0.000000e+00> : vector<2x8xf32>
    %63 = vector.multi_reduction <add>, %62, %cst_28 [2] : vector<2x8x8xf32> to vector<2x8xf32>
    %64 = vector.shape_cast %63 : vector<2x8xf32> to vector<2x8x1xf32>
    %65 = tpu.reciprocal %64 {approx = true} : vector<2x8x1xf32> -> vector<2x8x1xf32>
    %66 = vector.broadcast %65 : vector<2x8x1xf32> to vector<2x8x8xf32>
    %67 = arith.mulf %62, %66 : vector<2x8x8xf32>
    %68 = vector.extract_strided_slice %35 {offsets = [0, 0, 8], sizes = [2, 8, 8], strides = [1, 1, 1]} : vector<2x8x32xf32> to vector<2x8x8xf32>
    "tpu.trace_start"() <{level = 10 : i32, message = "bqk,bkd->bqd"}> : () -> ()
    %cst_29 = arith.constant dense<0.000000e+00> : vector<2x8x8xf32>
    %69 = tpu.matmul %67, %68, %cst_29 {dimension_numbers = #tpu.dot_dimension_numbers<[2], [1], [1], [2], [0, 0, 0, 1, 1, 2], [0], [0]>} : vector<2x8x8xf32>, vector<2x8x8xf32>, vector<2x8x8xf32> -> vector<2x8x8xf32>
    "tpu.trace_stop"() : () -> ()
    %70 = vector.extract_strided_slice %33 {offsets = [0, 0, 16], sizes = [2, 8, 8], strides = [1, 1, 1]} : vector<2x8x32xf32> to vector<2x8x8xf32>
    %71 = vector.extract_strided_slice %34 {offsets = [0, 0, 16], sizes = [2, 8, 8], strides = [1, 1, 1]} : vector<2x8x32xf32> to vector<2x8x8xf32>
    "tpu.trace_start"() <{level = 10 : i32, message = "bqd,bkd->bqk"}> : () -> ()
    %cst_30 = arith.constant dense<0.000000e+00> : vector<2x8x8xf32>
    %72 = tpu.matmul %70, %71, %cst_30 {dimension_numbers = #tpu.dot_dimension_numbers<[2], [2], [1], [1], [0, 0, 0, 1, 1, 1], [0], [0]>} : vector<2x8x8xf32>, vector<2x8x8xf32>, vector<2x8x8xf32> -> vector<2x8x8xf32>
    "tpu.trace_stop"() : () -> ()
    %cst_31 = arith.constant 0.353553385 : f32
    %73 = vector.broadcast %cst_31 : f32 to vector<2x8x8xf32>
    %74 = arith.mulf %72, %73 : vector<2x8x8xf32>
    %cst_32 = arith.constant dense<0xFF800000> : vector<2x8xf32>
    %75 = vector.multi_reduction <maximumf>, %74, %cst_32 [2] : vector<2x8x8xf32> to vector<2x8xf32>
    %76 = vector.shape_cast %75 : vector<2x8xf32> to vector<2x8x1xf32>
    %77 = vector.broadcast %76 : vector<2x8x1xf32> to vector<2x8x8xf32>
    %78 = arith.subf %74, %77 : vector<2x8x8xf32>
    %79 = math.exp %78 : vector<2x8x8xf32>
    %cst_33 = arith.constant dense<0.000000e+00> : vector<2x8xf32>
    %80 = vector.multi_reduction <add>, %79, %cst_33 [2] : vector<2x8x8xf32> to vector<2x8xf32>
    %81 = vector.shape_cast %80 : vector<2x8xf32> to vector<2x8x1xf32>
    %82 = tpu.reciprocal %81 {approx = true} : vector<2x8x1xf32> -> vector<2x8x1xf32>
    %83 = vector.broadcast %82 : vector<2x8x1xf32> to vector<2x8x8xf32>
    %84 = arith.mulf %79, %83 : vector<2x8x8xf32>
    %85 = vector.extract_strided_slice %35 {offsets = [0, 0, 16], sizes = [2, 8, 8], strides = [1, 1, 1]} : vector<2x8x32xf32> to vector<2x8x8xf32>
    "tpu.trace_start"() <{level = 10 : i32, message = "bqk,bkd->bqd"}> : () -> ()
    %cst_34 = arith.constant dense<0.000000e+00> : vector<2x8x8xf32>
    %86 = tpu.matmul %84, %85, %cst_34 {dimension_numbers = #tpu.dot_dimension_numbers<[2], [1], [1], [2], [0, 0, 0, 1, 1, 2], [0], [0]>} : vector<2x8x8xf32>, vector<2x8x8xf32>, vector<2x8x8xf32> -> vector<2x8x8xf32>
    "tpu.trace_stop"() : () -> ()
    %87 = vector.extract_strided_slice %33 {offsets = [0, 0, 24], sizes = [2, 8, 8], strides = [1, 1, 1]} : vector<2x8x32xf32> to vector<2x8x8xf32>
    %88 = vector.extract_strided_slice %34 {offsets = [0, 0, 24], sizes = [2, 8, 8], strides = [1, 1, 1]} : vector<2x8x32xf32> to vector<2x8x8xf32>
    "tpu.trace_start"() <{level = 10 : i32, message = "bqd,bkd->bqk"}> : () -> ()
    %cst_35 = arith.constant dense<0.000000e+00> : vector<2x8x8xf32>
    %89 = tpu.matmul %87, %88, %cst_35 {dimension_numbers = #tpu.dot_dimension_numbers<[2], [2], [1], [1], [0, 0, 0, 1, 1, 1], [0], [0]>} : vector<2x8x8xf32>, vector<2x8x8xf32>, vector<2x8x8xf32> -> vector<2x8x8xf32>
    "tpu.trace_stop"() : () -> ()
    %cst_36 = arith.constant 0.353553385 : f32
    %90 = vector.broadcast %cst_36 : f32 to vector<2x8x8xf32>
    %91 = arith.mulf %89, %90 : vector<2x8x8xf32>
    %cst_37 = arith.constant dense<0xFF800000> : vector<2x8xf32>
    %92 = vector.multi_reduction <maximumf>, %91, %cst_37 [2] : vector<2x8x8xf32> to vector<2x8xf32>
    %93 = vector.shape_cast %92 : vector<2x8xf32> to vector<2x8x1xf32>
    %94 = vector.broadcast %93 : vector<2x8x1xf32> to vector<2x8x8xf32>
    %95 = arith.subf %91, %94 : vector<2x8x8xf32>
    %96 = math.exp %95 : vector<2x8x8xf32>
    %cst_38 = arith.constant dense<0.000000e+00> : vector<2x8xf32>
    %97 = vector.multi_reduction <add>, %96, %cst_38 [2] : vector<2x8x8xf32> to vector<2x8xf32>
    %98 = vector.shape_cast %97 : vector<2x8xf32> to vector<2x8x1xf32>
    %99 = tpu.reciprocal %98 {approx = true} : vector<2x8x1xf32> -> vector<2x8x1xf32>
    %100 = vector.broadcast %99 : vector<2x8x1xf32> to vector<2x8x8xf32>
    %101 = arith.mulf %96, %100 : vector<2x8x8xf32>
    %102 = vector.extract_strided_slice %35 {offsets = [0, 0, 24], sizes = [2, 8, 8], strides = [1, 1, 1]} : vector<2x8x32xf32> to vector<2x8x8xf32>
    "tpu.trace_start"() <{level = 10 : i32, message = "bqk,bkd->bqd"}> : () -> ()
    %cst_39 = arith.constant dense<0.000000e+00> : vector<2x8x8xf32>
    %103 = tpu.matmul %101, %102, %cst_39 {dimension_numbers = #tpu.dot_dimension_numbers<[2], [1], [1], [2], [0, 0, 0, 1, 1, 2], [0], [0]>} : vector<2x8x8xf32>, vector<2x8x8xf32>, vector<2x8x8xf32> -> vector<2x8x8xf32>
    "tpu.trace_stop"() : () -> ()
    %104 = tpu.concatenate %52, %69, %86, %103 in 2 : vector<2x8x8xf32>, vector<2x8x8xf32>, vector<2x8x8xf32>, vector<2x8x8xf32> -> vector<2x8x32xf32>
    %105 = vector.shape_cast %104 : vector<2x8x32xf32> to vector<16x32xf32>
    %c0_40 = arith.constant 0 : index
    %c0_41 = arith.constant 0 : index
    %106 = vector.load %arg5[%c0_40, %c0_41] : memref<32x32xf32, #tpu.memory_space<vmem>>, vector<32x32xf32>
    %cst_42 = arith.constant dense<0.000000e+00> : vector<16x32xf32>
    %107 = tpu.matmul %105, %106, %cst_42 {dimension_numbers = #tpu.dot_dimension_numbers<[1], [0], [0], [1], [0, 0, 1, 1], [], []>} : vector<16x32xf32>, vector<32x32xf32>, vector<16x32xf32> -> vector<16x32xf32>
    %c0_43 = arith.constant 0 : index
    %c0_44 = arith.constant 0 : index
    %108 = vector.load %arg6[%c0_43, %c0_44] : memref<1x32xf32, #tpu.memory_space<vmem>>, vector<1x32xf32>
    %109 = vector.broadcast %108 : vector<1x32xf32> to vector<16x32xf32>
    %110 = arith.addf %107, %109 : vector<16x32xf32>
    %111 = arith.addf %1, %110 : vector<16x32xf32>
    %c0_45 = arith.constant 0 : index
    %c0_46 = arith.constant 0 : index
    %112 = vector.load %arg7[%c0_45, %c0_46] : memref<1x32xf32, #tpu.memory_space<vmem>>, vector<1x32xf32>
    %c0_47 = arith.constant 0 : index
    %c0_48 = arith.constant 0 : index
    %113 = vector.load %arg8[%c0_47, %c0_48] : memref<1x32xf32, #tpu.memory_space<vmem>>, vector<1x32xf32>
    %cst_49 = arith.constant dense<0.000000e+00> : vector<16xf32>
    %114 = vector.multi_reduction <add>, %111, %cst_49 [1] : vector<16x32xf32> to vector<16xf32>
    %115 = vector.shape_cast %114 : vector<16xf32> to vector<16x1xf32>
    %cst_50 = arith.constant 3.200000e+01 : f32
    %116 = vector.broadcast %cst_50 : f32 to vector<16x1xf32>
    %117 = arith.divf %115, %116 : vector<16x1xf32>
    %118 = vector.broadcast %117 : vector<16x1xf32> to vector<16x32xf32>
    %119 = arith.subf %111, %118 : vector<16x32xf32>
    %120 = arith.mulf %119, %119 : vector<16x32xf32>
    %cst_51 = arith.constant dense<0.000000e+00> : vector<16xf32>
    %121 = vector.multi_reduction <add>, %120, %cst_51 [1] : vector<16x32xf32> to vector<16xf32>
    %122 = vector.shape_cast %121 : vector<16xf32> to vector<16x1xf32>
    %cst_52 = arith.constant 3.200000e+01 : f32
    %123 = vector.broadcast %cst_52 : f32 to vector<16x1xf32>
    %124 = arith.divf %122, %123 : vector<16x1xf32>
    %cst_53 = arith.constant 9.99999974E-6 : f32
    %125 = vector.broadcast %cst_53 : f32 to vector<16x1xf32>
    %126 = arith.addf %124, %125 : vector<16x1xf32>
    %127 = math.rsqrt %126 : vector<16x1xf32>
    %128 = vector.broadcast %127 : vector<16x1xf32> to vector<16x32xf32>
    %129 = arith.mulf %119, %128 : vector<16x32xf32>
    %130 = vector.broadcast %112 : vector<1x32xf32> to vector<16x32xf32>
    %131 = arith.mulf %129, %130 : vector<16x32xf32>
    %132 = vector.broadcast %113 : vector<1x32xf32> to vector<16x32xf32>
    %133 = arith.addf %131, %132 : vector<16x32xf32>
    %c0_54 = arith.constant 0 : index
    %c0_55 = arith.constant 0 : index
    %134 = vector.load %arg9[%c0_54, %c0_55] : memref<32x128xf32, #tpu.memory_space<vmem>>, vector<32x128xf32>
    %cst_56 = arith.constant dense<0.000000e+00> : vector<16x128xf32>
    %135 = tpu.matmul %133, %134, %cst_56 {dimension_numbers = #tpu.dot_dimension_numbers<[1], [0], [0], [1], [0, 0, 1, 1], [], []>} : vector<16x32xf32>, vector<32x128xf32>, vector<16x128xf32> -> vector<16x128xf32>
    %c0_57 = arith.constant 0 : index
    %c0_58 = arith.constant 0 : index
    %136 = vector.load %arg10[%c0_57, %c0_58] : memref<1x128xf32, #tpu.memory_space<vmem>>, vector<1x128xf32>
    %137 = vector.broadcast %136 : vector<1x128xf32> to vector<16x128xf32>
    %138 = arith.addf %135, %137 : vector<16x128xf32>
    %cst_59 = arith.constant 5.000000e-01 : f32
    %139 = vector.broadcast %cst_59 : f32 to vector<16x128xf32>
    %140 = arith.mulf %139, %138 : vector<16x128xf32>
    %cst_60 = arith.constant 0.707106769 : f32
    %141 = vector.broadcast %cst_60 : f32 to vector<16x128xf32>
    %142 = arith.mulf %138, %141 : vector<16x128xf32>
    %143 = math.absf %142 : vector<16x128xf32>
    %cst_61 = arith.constant 0.327591091 : f32
    %144 = vector.broadcast %cst_61 : f32 to vector<16x128xf32>
    %145 = arith.mulf %144, %143 : vector<16x128xf32>
    %cst_62 = arith.constant 1.000000e+00 : f32
    %146 = vector.broadcast %cst_62 : f32 to vector<16x128xf32>
    %147 = arith.addf %146, %145 : vector<16x128xf32>
    %cst_63 = arith.constant 1.000000e+00 : f32
    %148 = vector.broadcast %cst_63 : f32 to vector<16x128xf32>
    %149 = arith.divf %148, %147 : vector<16x128xf32>
    %cst_64 = arith.constant 1.06140542 : f32
    %150 = vector.broadcast %cst_64 : f32 to vector<16x128xf32>
    %151 = arith.mulf %149, %150 : vector<16x128xf32>
    %cst_65 = arith.constant -1.45315206 : f32
    %152 = vector.broadcast %cst_65 : f32 to vector<16x128xf32>
    %153 = arith.addf %152, %151 : vector<16x128xf32>
    %154 = arith.mulf %149, %153 : vector<16x128xf32>
    %cst_66 = arith.constant 1.42141378 : f32
    %155 = vector.broadcast %cst_66 : f32 to vector<16x128xf32>
    %156 = arith.addf %155, %154 : vector<16x128xf32>
    %157 = arith.mulf %149, %156 : vector<16x128xf32>
    %cst_67 = arith.constant -0.284496725 : f32
    %158 = vector.broadcast %cst_67 : f32 to vector<16x128xf32>
    %159 = arith.addf %158, %157 : vector<16x128xf32>
    %160 = arith.mulf %149, %159 : vector<16x128xf32>
    %cst_68 = arith.constant 0.254829586 : f32
    %161 = vector.broadcast %cst_68 : f32 to vector<16x128xf32>
    %162 = arith.addf %161, %160 : vector<16x128xf32>
    %163 = arith.mulf %149, %162 : vector<16x128xf32>
    %cst_69 = arith.constant 0.000000e+00 : f32
    %164 = vector.broadcast %cst_69 : f32 to vector<16x128xf32>
    %165 = arith.subf %164, %143 : vector<16x128xf32>
    %166 = arith.mulf %165, %143 : vector<16x128xf32>
    %167 = math.exp %166 : vector<16x128xf32>
    %168 = arith.mulf %163, %167 : vector<16x128xf32>
    %cst_70 = arith.constant 1.000000e+00 : f32
    %169 = vector.broadcast %cst_70 : f32 to vector<16x128xf32>
    %170 = arith.subf %169, %168 : vector<16x128xf32>
    %cst_71 = arith.constant 0.000000e+00 : f32
    %171 = vector.broadcast %cst_71 : f32 to vector<16x128xf32>
    %172 = arith.cmpf olt, %142, %171 : vector<16x128xf32>
    %cst_72 = arith.constant 0.000000e+00 : f32
    %173 = vector.broadcast %cst_72 : f32 to vector<16x128xf32>
    %174 = arith.subf %173, %170 : vector<16x128xf32>
    %175 = arith.select %172, %174, %170 : vector<16x128xi1>, vector<16x128xf32>
    %cst_73 = arith.constant 1.000000e+00 : f32
    %176 = vector.broadcast %cst_73 : f32 to vector<16x128xf32>
    %177 = arith.addf %176, %175 : vector<16x128xf32>
    %178 = arith.mulf %140, %177 : vector<16x128xf32>
    %c0_74 = arith.constant 0 : index
    %c0_75 = arith.constant 0 : index
    %179 = vector.load %arg11[%c0_74, %c0_75] : memref<128x32xf32, #tpu.memory_space<vmem>>, vector<128x32xf32>
    %cst_76 = arith.constant dense<0.000000e+00> : vector<16x32xf32>
    %180 = tpu.matmul %178, %179, %cst_76 {dimension_numbers = #tpu.dot_dimension_numbers<[1], [0], [0], [1], [0, 0, 1, 1], [], []>} : vector<16x128xf32>, vector<128x32xf32>, vector<16x32xf32> -> vector<16x32xf32>
    %c0_77 = arith.constant 0 : index
    %c0_78 = arith.constant 0 : index
    %181 = vector.load %arg12[%c0_77, %c0_78] : memref<1x32xf32, #tpu.memory_space<vmem>>, vector<1x32xf32>
    %182 = vector.broadcast %181 : vector<1x32xf32> to vector<16x32xf32>
    %183 = arith.addf %180, %182 : vector<16x32xf32>
    %184 = arith.addf %111, %183 : vector<16x32xf32>
    %185 = vector.shape_cast %184 : vector<16x32xf32> to vector<2x8x32xf32>
    %c0_79 = arith.constant 0 : index
    %c0_80 = arith.constant 0 : index
    %c0_81 = arith.constant 0 : index
    %186 = vector.load %arg13[%c0_79, %c0_80, %c0_81] : memref<2x8x32xf32, #tpu.memory_space<vmem>>, vector<2x8x32xf32>
    tpu.vector_store %arg13[%c0_79, %c0_80, %c0_81], %185 {strides = array<i32>} : memref<2x8x32xf32, #tpu.memory_space<vmem>>, vector<2x8x32xf32>,
    return
  }
  func.func @transform_0(%arg0: i32) -> (i32, i32, i32) {
    %c0_i32 = arith.constant 0 : i32
    %c0_i32_0 = arith.constant 0 : i32
    %c0_i32_1 = arith.constant 0 : i32
    return %arg0, %c0_i32, %c0_i32_0 : i32, i32, i32
  }
  func.func @transform_1(%arg0: i32) -> (i32, i32) {
    %c0_i32 = arith.constant 0 : i32
    %c0_i32_0 = arith.constant 0 : i32
    %c0_i32_1 = arith.constant 0 : i32
    return %c0_i32, %c0_i32_0 : i32, i32
  }
  func.func @transform_2(%arg0: i32) -> (i32, i32) {
    %c0_i32 = arith.constant 0 : i32
    %c0_i32_0 = arith.constant 0 : i32
    %c0_i32_1 = arith.constant 0 : i32
    return %c0_i32, %c0_i32_0 : i32, i32
  }
  func.func @transform_3(%arg0: i32) -> (i32, i32, i32) {
    %c0_i32 = arith.constant 0 : i32
    %c0_i32_0 = arith.constant 0 : i32
    %c0_i32_1 = arith.constant 0 : i32
    %c0_i32_2 = arith.constant 0 : i32
    return %c0_i32, %c0_i32_0, %c0_i32_1 : i32, i32, i32
  }
  func.func @transform_4(%arg0: i32) -> (i32, i32) {
    %c0_i32 = arith.constant 0 : i32
    %c0_i32_0 = arith.constant 0 : i32
    %c0_i32_1 = arith.constant 0 : i32
    return %c0_i32, %c0_i32_0 : i32, i32
  }
  func.func @transform_5(%arg0: i32) -> (i32, i32) {
    %c0_i32 = arith.constant 0 : i32
    %c0_i32_0 = arith.constant 0 : i32
    %c0_i32_1 = arith.constant 0 : i32
    return %c0_i32, %c0_i32_0 : i32, i32
  }
  func.func @transform_6(%arg0: i32) -> (i32, i32) {
    %c0_i32 = arith.constant 0 : i32
    %c0_i32_0 = arith.constant 0 : i32
    %c0_i32_1 = arith.constant 0 : i32
    return %c0_i32, %c0_i32_0 : i32, i32
  }
  func.func @transform_7(%arg0: i32) -> (i32, i32) {
    %c0_i32 = arith.constant 0 : i32
    %c0_i32_0 = arith.constant 0 : i32
    %c0_i32_1 = arith.constant 0 : i32
    return %c0_i32, %c0_i32_0 : i32, i32
  }
  func.func @transform_8(%arg0: i32) -> (i32, i32) {
    %c0_i32 = arith.constant 0 : i32
    %c0_i32_0 = arith.constant 0 : i32
    %c0_i32_1 = arith.constant 0 : i32
    return %c0_i32, %c0_i32_0 : i32, i32
  }
  func.func @transform_9(%arg0: i32) -> (i32, i32) {
    %c0_i32 = arith.constant 0 : i32
    %c0_i32_0 = arith.constant 0 : i32
    %c0_i32_1 = arith.constant 0 : i32
    return %c0_i32, %c0_i32_0 : i32, i32
  }
  func.func @transform_10(%arg0: i32) -> (i32, i32) {
    %c0_i32 = arith.constant 0 : i32
    %c0_i32_0 = arith.constant 0 : i32
    %c0_i32_1 = arith.constant 0 : i32
    return %c0_i32, %c0_i32_0 : i32, i32
  }
  func.func @transform_11(%arg0: i32) -> (i32, i32) {
    %c0_i32 = arith.constant 0 : i32
    %c0_i32_0 = arith.constant 0 : i32
    %c0_i32_1 = arith.constant 0 : i32
    return %c0_i32, %c0_i32_0 : i32, i32
  }
  func.func @transform_12(%arg0: i32) -> (i32, i32, i32) {
    %c0_i32 = arith.constant 0 : i32
    %c0_i32_0 = arith.constant 0 : i32
    %c0_i32_1 = arith.constant 0 : i32
    return %arg0, %c0_i32, %c0_i32_0 : i32, i32, i32
  }
}

</mosaic_0001>

<bundles_post_ra>
// kernel: tpu_custom_call.1
= control target key start
LH: loop header
LB: loop body
LE: loop exit
PB: predicated region body
PF: predicated region fallthrough
CT: control target
= control target key end

     0   :  { %17 = vsyncpa [#allocation3], 0  ;;  %s1573_s0 = inlined_call_operand.hbm [shape: f32[2,8,32], index: 0, kind: input, shape index: {}]   ;;  %s1574_s1 = inlined_call_operand.vmem [shape: f32[1,32], index: 1, kind: input, shape index: {}]   ;;  %s1575_s2 = inlined_call_operand.vmem [shape: f32[1,32], index: 2, kind: input, shape index: {}]   ;;  %s1576_s3 = inlined_call_operand.vmem [shape: f32[3,32,32], index: 3, kind: input, shape index: {}]   ;;  %s1577_s4 = inlined_call_operand.vmem [shape: f32[32,32], index: 4, kind: input, shape index: {}]   ;;  %s1578_s5 = inlined_call_operand.vmem [shape: f32[1,32], index: 5, kind: input, shape index: {}]   ;;  %s1579_s6 = inlined_call_operand.vmem [shape: f32[1,32], index: 6, kind: input, shape index: {}]   ;;  %s1580_s7 = inlined_call_operand.vmem [shape: f32[1,32], index: 7, kind: input, shape index: {}]   ;;  %s1581_s8 = inlined_call_operand.vmem [shape: f32[32,128], index: 8, kind: input, shape index: {}]   ;;  %s1582_s9 = inlined_call_operand.vmem [shape: f32[1,128], index: 9, kind: input, shape index: {}]   ;;  %s1583_s10 = inlined_call_operand.vmem [shape: f32[128,32], index: 10, kind: input, shape index: {}]   ;;  %s1584_s11 = inlined_call_operand.vmem [shape: f32[1,32], index: 11, kind: input, shape index: {}]   ;;  %s1585_s12 = inlined_call_operand.hbm [shape: f32[2,8,32], index: 12, kind: output, shape index: {}]  }
   0x1   :  { %18 = vsyncpa [#allocation4], 0  ;;  %s23_s23 = sshll.u32 %s1573_s0, 4  ;;  %s1210_s24 = smov [#allocation2]   ;;  %s24_s23 = int_to_ptr.hbm [resolvable:$true] %s23_s23 }
   0x2   :  { %s25_s25 = sshll.u32 %s1210_s24, 4  ;;  %s1211_s26 = smov 128   ;;  %s26_s25 = int_to_ptr.vmem [resolvable:$true] %s25_s25 }
   0x3   :  { %s1212_s27 = smov 8  }
   0x4   :  { %31 = dma.hbm_to_vmem [thread:$0]  %s24_s23, 256, %s26_s25, [#allocation3], %s1211_s26, %s1211_s26, %s1212_s27  }
   0x5   :  { %1206 = dma.done.wait [#allocation3], 256  }
   0x6   :  { %1207 = vsyncadd [#allocation3], 4294967040  ;;  %vm62_vm0 = vcmask 261120   ;;  %v1291_v0 = vld [vmem:[#allocation2 + $0x8] sm:$0xff]  ;;  %v1293_v1 = vld [vmem:[#allocation2] sm:$0xff]  ;;  %v1213_v4 = vmov 32.0  }
   0x7   :  { %v66_v2 = vsel %vm62_vm0, %v1291_v0, 0.0  ;;  %v63_v3 = vsel %vm62_vm0, %v1293_v1, 0.0  ;;  %1108 = vrcp.f32 %v1213_v4  ;;  %v127_v21 = vld [vmem:[%s1576_s3 + $0x18] sm:$0xff]  ;;  %v126_v24 = vld [vmem:[%s1576_s3 + $0x10] sm:$0xff]  ;;  %v125_v27 = vld [vmem:[%s1576_s3 + $0x8] sm:$0xff]  ;;  %vm213_vm8 = vcmask 64512  }
   0x8   :  { %67 = vadd.xlane.f32.xlu1 %v66_v2  ;;  %64 = vadd.xlane.f32.xlu0 %v63_v3  ;;  %v1049_v22 = vld [vmem:[%s1576_s3 + $0x38] sm:$0xff]  ;;  %v1048_v25 = vld [vmem:[%s1576_s3 + $0x30] sm:$0xff]  ;;  %v1047_v28 = vld [vmem:[%s1576_s3 + $0x28] sm:$0xff]  ;;  %s1216_s19 = smov 104   ;;  %s1217_s20 = smov 16   ;;  %vm760_vm9 = vcmask 130048  }
   0x9   :  { %v1055_v23 = vld [vmem:[%s1576_s3 + $0x58] sm:$0xff]  ;;  %146 = vmatpush.msra.mxu0 %v127_v21  ;;  %174 = vmatpush.msra.mxu1 %v1049_v22  ;;  %v1054_v26 = vld [vmem:[%s1576_s3 + $0x50] sm:$0xff]  ;;  %v1053_v29 = vld [vmem:[%s1576_s3 + $0x48] sm:$0xff]  ;;  %s1218_s21 = smov 24   ;;  %vm763_vm10 = vcmask 195584   ;;  %s1219_s29 = smov [#allocation5]  }
   0xa   :  { %202 = vmatpush.msra.mxu2 %v1055_v23  ;;  %v124_v30 = vld [vmem:[%s1576_s3] sm:$0xff]  ;;  %s1029_s30 = sshll.u32 %s1219_s29, 4  ;;  %s1031_s13 = sshll.u32 %s1585_s12, 4  ;;  %s1030_s30 = int_to_ptr.vmem [resolvable:$true] %s1029_s30  ;;  %s1032_s13 = int_to_ptr.hbm [resolvable:$true] %s1031_s13 }
   0xb   :  { %147 = vmatpush.msra.mxu0 %v126_v24  ;;  %175 = vmatpush.msra.mxu1 %v1048_v25  ;;  %v1046_v31 = vld [vmem:[%s1576_s3 + $0x20] sm:$0xff] }
   0xc   :  { %203 = vmatpush.msra.mxu2 %v1054_v26  ;;  %v1052_v32 = vld [vmem:[%s1576_s3 + $0x40] sm:$0xff] }
   0xd   :  { %v1109_v5 = vpop.eup %1108  ;;  %148 = vmatpush.msra.mxu0 %v125_v27  ;;  %176 = vmatpush.msra.mxu1 %v1047_v28  ;;  %v1101_v51 = vld [vmem:[%s1574_s1] ss:$0 sm:$0xff]  ;;  %s1214_s1 = smov 120  }
   0xe   :  { %v70_v6 = vmul.f32 32.0, %v1109_v5  ;;  %vm74_vm1 = vweird.f32 %v1109_v5  ;;  %204 = vmatpush.msra.mxu2 %v1053_v29  ;;  %v1102_v54 = vld [vmem:[%s1575_s2] ss:$0 sm:$0xff]  ;;  %s1215_s2 = smov 112  }
   0xf   :  { %149 = vmatpush.msra.mxu0 %v124_v30  ;;  %177 = vmatpush.msra.mxu1 %v1046_v31 }
  0x10   :  { %v71_v7 = vsub.f32 1.0, %v70_v6  ;;  %205 = vmatpush.msra.mxu2 %v1052_v32 }
  0x12   :  { %v72_v8 = vmul.f32 %v1109_v5, %v71_v7 }
  0x14   :  { %v73_v9 = vadd.f32 %v1109_v5, %v72_v8 }
  0x16   :  { %v1299_v10 = vsel %vm74_vm1, %v1109_v5, %v73_v9 }
  0x7b   :  { %v68_v11 = vpop.xlane.xlu1 %67  ;;  %v65_v12 = vpop.xlane.xlu0 %64 }
  0x7c   :  { %v77_v13 = vmul.f32 %v1299_v10, %v68_v11  ;;  %v76_v14 = vmul.f32 %v1299_v10, %v65_v12 }
  0x7e   :  { %v1304_v15 = vsub.f32 %v1291_v0, %v77_v13  ;;  %v78_v16 = vsub.f32 %v1293_v1, %v76_v14 }
  0x80   :  { %v81_v17 = vmul.f32 %v1304_v15, %v1304_v15  ;;  %v80_v18 = vmul.f32 %v78_v16, %v78_v16 }
  0x82   :  { %v85_v19 = vsel %vm62_vm0, %v81_v17, 0.0  ;;  %v82_v20 = vsel %vm62_vm0, %v80_v18, 0.0 }
  0x83   :  { %86 = vadd.xlane.f32.xlu1 %v85_v19  ;;  %83 = vadd.xlane.f32.xlu0 %v82_v20 }
  0xf6   :  { %v87_v33 = vpop.xlane.xlu1 %86  ;;  %v84_v34 = vpop.xlane.xlu0 %83 }
  0xf7   :  { %v89_v35 = vmul.f32 %v87_v33, %v1299_v10  ;;  %v88_v36 = vmul.f32 %v84_v34, %v1299_v10 }
  0xf9   :  { %v91_v37 = vadd.f32 1e-05, %v89_v35  ;;  %v90_v38 = vadd.f32 1e-05, %v88_v36 }
  0xfb   :  { %1110 = vrsqrt.f32 %v91_v37  ;;  %vm108_vm2 = vweird.f32 %v91_v37  ;;  %vm98_vm6 = vweird.f32 %v90_v38 }
  0xfc   :  { %1112 = vrsqrt.f32 %v90_v38 }
 0x101   :  { %v1111_v39 = vpop.eup %1110 }
 0x102   :  { %v1113_v40 = vpop.eup %1112  ;;  %v103_v41 = vmul.f32 %v1111_v39, %v91_v37  ;;  %vm109_vm3 = vweird.f32 %v1111_v39 }
 0x103   :  { %v93_v42 = vmul.f32 %v1113_v40, %v90_v38  ;;  %vm99_vm4 = vweird.f32 %v1113_v40  ;;  %vm110_vm5 = vmor %vm108_vm2, %vm109_vm3 }
 0x104   :  { %v104_v43 = vmul.f32 %v1111_v39, %v103_v41  ;;  %vm100_vm7 = vmor %vm98_vm6, %vm99_vm4 }
 0x105   :  { %v94_v44 = vmul.f32 %v1113_v40, %v93_v42 }
 0x106   :  { %v105_v45 = vmul.f32 0.5, %v104_v43 }
 0x107   :  { %v95_v46 = vmul.f32 0.5, %v94_v44 }
 0x108   :  { %v106_v47 = vsub.f32 1.5, %v105_v45 }
 0x109   :  { %v96_v48 = vsub.f32 1.5, %v95_v46 }
 0x10a   :  { %v107_v49 = vmul.f32 %v1111_v39, %v106_v47 }
 0x10b   :  { %v97_v50 = vmul.f32 %v1113_v40, %v96_v48 }
 0x10c   :  { %v111_v55 = vsel %vm110_vm5, %v1111_v39, %v107_v49 }
 0x10d   :  { %v101_v52 = vsel %vm100_vm7, %v1113_v40, %v97_v50  ;;  %v113_v58 = vmul.f32 %v111_v55, %v1304_v15 }
 0x10e   :  { %v112_v53 = vmul.f32 %v101_v52, %v78_v16 }
 0x10f   :  { %v118_v59 = vmul.f32 %v1101_v51, %v113_v58 }
 0x110   :  { %v117_v56 = vmul.f32 %v1101_v51, %v112_v53 }
 0x111   :  { %v123_v60 = vadd.f32 %v1102_v54, %v118_v59 }
 0x112   :  { %v122_v57 = vadd.f32 %v1102_v54, %v117_v56 }
 0x114   :  { %1044 = vmatmul.msk.f32.vlgmr.msra.gmra.mxu0 %vm62_vm0, %v122_v57  ;;  %1050 = vmatmul.msk.f32.vlgmr.msra.gmra.mxu1 %vm62_vm0, %v122_v57 }
 0x115   :  { %1056 = vmatmul.msk.f32.vlgmr.msra.gmra.mxu2 %vm62_vm0, %v122_v57 }
 0x11c   :  { %1045 = vmatmul.msk.f32.gmra.mxu0 %vm62_vm0, %v123_v60  ;;  %1051 = vmatmul.msk.f32.gmra.mxu1 %vm62_vm0, %v123_v60 }
 0x11d   :  { %1057 = vmatmul.msk.f32.gmra.mxu2 %vm62_vm0, %v123_v60 }
 0x191   :  { %v151_v61 = vpop.f32.mrf.mxu0  ;;  %v179_v62 = vpop.f32.mrf.mxu1 }
 0x192   :  { %338 = vrot.lane.b32.xlu0 %v179_v62, %s1214_s1  ;;  %1058 = vmatpush.xpose.msk.msrb.mxu0 %vm213_vm8, %v179_v62 }
 0x193   :  { %336 = vrot.lane.b32.xlu1 %v151_v61, %s1214_s1 }
 0x195   :  { %1059 = vmatmul.msk.f32.vlgmr.msrb.gmra.mxu0 %vm213_vm8, %v151_v61 }
 0x198   :  { %v1366_v63 = vpop.f32.mrf.mxu2 }
 0x199   :  { %308 = vmatpush.msrb.mxu1 %v1366_v63  ;;  %v182_v2 = vpop.f32.mrf.mxu1  ;;  %v154_v3 = vpop.f32.mrf.mxu0 }
 0x19a   :  { %472 = vrot.lane.b32.xlu0 %v179_v62, %s1215_s2  ;;  %366 = vrot.lane.b32.xlu2 %v182_v2, %s1214_s1 }
 0x19b   :  { %1060 = vmatpush.xpose.msk.msra.mxu0 %vm213_vm8, %v182_v2  ;;  %470 = vrot.lane.b32.xlu1 %v151_v61, %s1215_s2 }
 0x19e   :  { %1061 = vmatmul.msk.f32.vlgmr.msra.gmra.mxu0 %vm213_vm8, %v154_v3 }
 0x1a0   :  { %v1374_v4 = vpop.f32.mrf.mxu2 }
 0x1a1   :  { %331 = vmatpush.msrb.mxu0 %v1374_v4 }
 0x1a2   :  { %500 = vrot.lane.b32.xlu0 %v182_v2, %s1215_s2  ;;  %364 = vrot.lane.b32.xlu2 %v154_v3, %s1214_s1 }
 0x1a3   :  { %498 = vrot.lane.b32.xlu1 %v154_v3, %s1215_s2 }
 0x1aa   :  { %602 = vrot.lane.b32.xlu0 %v151_v61, %s1216_s19 }
 0x1ab   :  { %630 = vrot.lane.b32.xlu1 %v154_v3, %s1216_s19 }
 0x1f4   :  { %v367_v5 = vpop.permute.xlu2 %366 }
 0x1f5   :  { %1066 = vmatpush.xpose.msk.msrb.mxu2 %vm213_vm8, %v367_v5 }
 0x1fc   :  { %v365_v6 = vpop.permute.xlu2 %364 }
 0x1fd   :  { %1067 = vmatmul.msk.f32.vlgmr.msrb.gmra.mxu2 %vm213_vm8, %v365_v6 }
 0x204   :  { %v339_v7 = vpop.permute.xlu0 %338 }
 0x205   :  { %v337_v8 = vpop.permute.xlu1 %336  ;;  %1064 = vmatpush.xpose.msk.msra.mxu1 %vm213_vm8, %v339_v7 }
 0x20c   :  { %v473_v9 = vpop.permute.xlu0 %472 }
 0x20d   :  { %v471_v11 = vpop.permute.xlu1 %470 }
 0x212   :  { %v237_v12 = vpop.f32.mrf.mxu0 }
 0x213   :  { %v266_v13 = vmul.f32 0.35355338, %v237_v12 }
 0x214   :  { %v501_v14 = vpop.permute.xlu0 %500 }
 0x215   :  { %1072 = vmatpush.xpose.msk.msra.mxu2 %vm213_vm8, %v501_v14  ;;  %v268_v15 = vsel %vm213_vm8, %v266_v13, -inf  ;;  %v499_v16 = vpop.permute.xlu1 %498 }
 0x216   :  { %269 = vmax.xlane.f32.xlu2 %v268_v15 }
 0x218   :  { %1073 = vmatmul.msk.f32.vlgmr.msra.gmra.mxu2 %vm213_vm8, %v499_v16  ;;  %v1096_v16 = vpack.i.bf16 %v1374_v4, %v1366_v63 }
 0x21b   :  { %v263_v25 = vpop.f32.mrf.mxu0 }
 0x21c   :  { %v267_v26 = vmul.f32 0.35355338, %v263_v25  ;;  %v603_v34 = vpop.permute.xlu0 %602 }
 0x21d   :  { %v631_v33 = vpop.permute.xlu1 %630 }
 0x21e   :  { %v271_v27 = vsel %vm213_vm8, %v267_v26, -inf }
 0x22e   :  { %604 = vrot.lane.b32.xlu2 %v179_v62, %s1216_s19 }
 0x280   :  { %v389_v17 = vpop.f32.mrf.mxu2 }
 0x281   :  { %v393_v18 = vmul.f32 0.35355338, %v389_v17 }
 0x283   :  { %v397_v19 = vsel %vm213_vm8, %v393_v18, -inf }
 0x284   :  { %398 = vmax.xlane.f32.xlu0 %v397_v19 }
 0x289   :  { %v270_v20 = vpop.xlane.xlu2 %269 }
 0x28a   :  { %v274_v21 = vsub.f32 %v266_v13, %v270_v20 }
 0x28c   :  { %v276_v22 = vmul.f32 1.442695, %v274_v21 }
 0x28e   :  { %1114 = vpow2.f32 %v276_v22 }
 0x291   :  { %v605_v28 = vpop.permute.xlu2 %604 }
 0x294   :  { %v1115_v23 = vpop.eup %1114 }
 0x295   :  { %v280_v24 = vsel %vm213_vm8, %v1115_v23, 0.0 }
 0x296   :  { %281 = vadd.xlane.f32.xlu2 %v280_v24 }
 0x29b   :  { %v523_v36 = vpop.f32.mrf.mxu2 }
 0x29c   :  { %v527_v49 = vmul.f32 0.35355338, %v523_v36 }
 0x29e   :  { %v531_v54 = vsel %vm213_vm8, %v527_v49, -inf }
 0x2ae   :  { %632 = vrot.lane.b32.xlu2 %v182_v2, %s1216_s19 }
 0x2d7   :  { %272 = vmax.xlane.f32.xlu2 %v271_v27 }
 0x2f7   :  { %v399_v50 = vpop.xlane.xlu0 %398 }
 0x2f8   :  { %v401_v53 = vsub.f32 %v393_v18, %v399_v50 }
 0x2fa   :  { %v404_v56 = vmul.f32 1.442695, %v401_v53 }
 0x309   :  { %v282_v29 = vpop.xlane.xlu2 %281 }
 0x30a   :  { %1116 = vrcp.f32 %v282_v29 }
 0x310   :  { %v1117_v30 = vpop.eup %1116 }
 0x311   :  { %v633_v31 = vpop.permute.xlu2 %632  ;;  %v288_v32 = vmul.f32 %v1117_v30, %v1115_v23 }
 0x312   :  { %1078 = vmatpush.xpose.msk.msrb.mxu2 %vm213_vm8, %v633_v31 }
 0x313   :  { %1062 = vmatmul.msk.f32.vlgmr.msrb.gmra.mxu1 %vm213_vm8, %v288_v32 }
 0x314   :  { %1070 = vmatpush.xpose.msk.msrb.mxu1 %vm213_vm8, %v473_v9 }
 0x315   :  { %1079 = vmatmul.msk.f32.vlgmr.msrb.gmra.mxu2 %vm213_vm8, %v631_v33 }
 0x31b   :  { %1065 = vmatmul.msk.f32.vlgmr.msra.gmra.mxu1 %vm213_vm8, %v337_v8 }
 0x31c   :  { %1076 = vmatpush.xpose.msk.msra.mxu1 %vm213_vm8, %v605_v28 }
 0x323   :  { %1071 = vmatmul.msk.f32.vlgmr.msrb.gmra.mxu1 %vm213_vm8, %v471_v11 }
 0x32b   :  { %1077 = vmatmul.msk.f32.vlgmr.msra.gmra.mxu1 %vm213_vm8, %v603_v34 }
 0x34a   :  { %v273_v41 = vpop.xlane.xlu2 %272 }
 0x34b   :  { %v275_v45 = vsub.f32 %v267_v26, %v273_v41 }
 0x34d   :  { %v278_v48 = vmul.f32 1.442695, %v275_v45 }
 0x34f   :  { %1118 = vpow2.f32 %v278_v48 }
 0x350   :  { %1120 = vpow2.f32 %v404_v56 }
 0x355   :  { %v1119_v57 = vpop.eup %1118 }
 0x356   :  { %v283_v58 = vsel %vm213_vm8, %v1119_v57, 0.0  ;;  %v1121_v59 = vpop.eup %1120 }
 0x357   :  { %v409_v60 = vsel %vm213_vm8, %v1121_v59, 0.0 }
 0x390   :  { %v1401_v35 = vpop.f32.mrf.mxu1 }
 0x398   :  { %v361_v37 = vpop.f32.mrf.mxu1  ;;  %v655_v40 = vpop.f32.mrf.mxu2 }
 0x399   :  { %v392_v38 = vmul.f32 0.35355338, %v361_v37  ;;  %v659_v42 = vmul.f32 0.35355338, %v655_v40 }
 0x39b   :  { %v394_v39 = vsel %vm213_vm8, %v392_v38, -inf  ;;  %v663_v47 = vsel %vm213_vm8, %v659_v42, -inf }
 0x39c   :  { %395 = vmax.xlane.f32.xlu0 %v394_v39 }
 0x3a0   :  { %v495_v43 = vpop.f32.mrf.mxu1 }
 0x3a1   :  { %v526_v44 = vmul.f32 0.35355338, %v495_v43 }
 0x3a3   :  { %v528_v46 = vsel %vm213_vm8, %v526_v44, -inf }
 0x3a4   :  { %529 = vmax.xlane.f32.xlu1 %v528_v46  ;;  %664 = vmax.xlane.f32.xlu0 %v663_v47 }
 0x3a8   :  { %v627_v51 = vpop.f32.mrf.mxu1 }
 0x3a9   :  { %v658_v52 = vmul.f32 0.35355338, %v627_v51 }
 0x3ab   :  { %v660_v55 = vsel %vm213_vm8, %v658_v52, -inf }
 0x3ac   :  { %532 = vmax.xlane.f32.xlu1 %v531_v54  ;;  %661 = vmax.xlane.f32.xlu2 %v660_v55 }
 0x3b4   :  { %284 = vadd.xlane.f32.xlu1 %v283_v58 }
 0x3bc   :  { %410 = vadd.xlane.f32.xlu1 %v409_v60 }
 0x3d5   :  { %550 = vrot.lane.b32.xlu1 %v1366_v63, %s1215_s2 }
 0x3dd   :  { %576 = vrot.lane.b32.xlu1 %v1374_v4, %s1215_s2 }
 0x40f   :  { %v396_v61 = vpop.xlane.xlu0 %395 }
 0x410   :  { %v400_v62 = vsub.f32 %v392_v38, %v396_v61 }
 0x412   :  { %v402_v2 = vmul.f32 1.442695, %v400_v62  ;;  %v769_v62 = vld [vmem:[%s1577_s4 + $0x18] sm:$0xff] }
 0x413   :  { %792 = vmatpush.msrb.mxu1 %v769_v62 }
 0x414   :  { %1122 = vpow2.f32 %v402_v2  ;;  %v768_v2 = vld [vmem:[%s1577_s4 + $0x10] sm:$0xff] }
 0x415   :  { %793 = vmatpush.msrb.mxu1 %v768_v2 }
 0x417   :  { %v530_v3 = vpop.xlane.xlu1 %529  ;;  %v665_v17 = vpop.xlane.xlu0 %664 }
 0x418   :  { %v667_v18 = vsub.f32 %v659_v42, %v665_v17  ;;  %v534_v20 = vsub.f32 %v526_v44, %v530_v3  ;;  %v767_v3 = vld [vmem:[%s1577_s4 + $0x8] sm:$0xff] }
 0x419   :  { %794 = vmatpush.msrb.mxu1 %v767_v3 }
 0x41a   :  { %v1123_v5 = vpop.eup %1122  ;;  %v670_v19 = vmul.f32 1.442695, %v667_v18  ;;  %v536_v22 = vmul.f32 1.442695, %v534_v20 }
 0x41b   :  { %v406_v6 = vsel %vm213_vm8, %v1123_v5, 0.0 }
 0x41c   :  { %407 = vadd.xlane.f32.xlu2 %v406_v6 }
 0x41f   :  { %v533_v7 = vpop.xlane.xlu1 %532  ;;  %v662_v24 = vpop.xlane.xlu2 %661 }
 0x420   :  { %v535_v8 = vsub.f32 %v527_v49, %v533_v7  ;;  %v666_v25 = vsub.f32 %v658_v52, %v662_v24 }
 0x422   :  { %v538_v9 = vmul.f32 1.442695, %v535_v8  ;;  %v668_v26 = vmul.f32 1.442695, %v666_v25 }
 0x424   :  { %1124 = vpow2.f32 %v538_v9 }
 0x427   :  { %v285_v11 = vpop.xlane.xlu1 %284 }
 0x428   :  { %1126 = vrcp.f32 %v285_v11 }
 0x429   :  { %1128 = vpow2.f32 %v670_v19  ;;  %v1103_v19 = vld [vmem:[%s1578_s5] ss:$0 sm:$0xff] }
 0x42a   :  { %v1125_v12 = vpop.eup %1124  ;;  %1130 = vpow2.f32 %v536_v22 }
 0x42b   :  { %v543_v13 = vsel %vm213_vm8, %v1125_v12, 0.0  ;;  %1132 = vpow2.f32 %v668_v26 }
 0x42c   :  { %544 = vadd.xlane.f32.xlu0 %v543_v13 }
 0x42e   :  { %v1127_v14 = vpop.eup %1126 }
 0x42f   :  { %v289_v15 = vmul.f32 %v1127_v14, %v1119_v57  ;;  %v1129_v21 = vpop.eup %1128  ;;  %v411_v30 = vpop.xlane.xlu1 %410 }
 0x430   :  { %v675_v23 = vsel %vm213_vm8, %v1129_v21, 0.0  ;;  %v1131_v27 = vpop.eup %1130  ;;  %1134 = vrcp.f32 %v411_v30 }
 0x431   :  { %1063 = vmatmul.msk.f32.vlgmr.msrb.gmra.mxu0 %vm213_vm8, %v289_v15  ;;  %v540_v28 = vsel %vm213_vm8, %v1131_v27, 0.0 }
 0x434   :  { %1097 = vrot.lane.b32.xlu2 %v1096_v16, %s1214_s1 }
 0x440   :  { %682 = vrot.lane.b32.xlu0 %v1366_v63, %s1216_s19  ;;  %v1133_v63 = vpop.eup %1132 }
 0x441   :  { %v672_v29 = vsel %vm213_vm8, %v1133_v63, 0.0  ;;  %v1135_v33 = vpop.eup %1134 }
 0x442   :  { %v415_v39 = vmul.f32 %v1135_v33, %v1121_v59 }
 0x447   :  { %v551_v32 = vpop.permute.xlu1 %550 }
 0x44f   :  { %v577_v41 = vpop.permute.xlu1 %576 }
 0x45d   :  { %676 = vadd.xlane.f32.xlu2 %v675_v23 }
 0x46a   :  { %541 = vadd.xlane.f32.xlu0 %v540_v28 }
 0x472   :  { %673 = vadd.xlane.f32.xlu0 %v672_v29 }
 0x486   :  { %708 = vrot.lane.b32.xlu0 %v1374_v4, %s1216_s19 }
 0x48f   :  { %v408_v31 = vpop.xlane.xlu2 %407 }
 0x490   :  { %1136 = vrcp.f32 %v408_v31 }
 0x496   :  { %v1137_v34 = vpop.eup %1136 }
 0x497   :  { %v1098_v36 = vpop.permute.xlu2 %1097  ;;  %v414_v40 = vmul.f32 %v1137_v34, %v1123_v5  ;;  %v766_v5 = vld [vmem:[%s1577_s4] sm:$0xff]  ;;  %v864_v34 = vld [vmem:[%s1581_s8 + $0x18] sm:$0xff] }
 0x498   :  { %v1100_v37 = vunpack.i.h.bf16 %v1098_v36  ;;  %v1099_v38 = vunpack.i.l.bf16 %v1098_v36  ;;  %795 = vmatpush.msrb.mxu1 %v766_v5  ;;  %887 = vmatpush.msra.mxu2 %v864_v34  ;;  %v863_v36 = vld [vmem:[%s1581_s8 + $0x10] sm:$0xff]  ;;  %v993_v5 = vld [vmem:[%s1583_s10 + $0x78] sm:$0xff] }
 0x49a   :  { %438 = vmatpush.msra.mxu3 %v1099_v38  ;;  %465 = vmatpush.msra.mxu0 %v1100_v37  ;;  %v862_v37 = vld [vmem:[%s1581_s8 + $0x8] sm:$0xff]  ;;  %v861_v38 = vld [vmem:[%s1581_s8] sm:$0xff] }
 0x49b   :  { %1068 = vmatmul.msk.f32.vlgmr.msra.gmra.mxu3 %vm213_vm8, %v414_v40  ;;  %1069 = vmatmul.msk.f32.vlgmr.msra.gmra.mxu0 %vm213_vm8, %v415_v39 }
 0x49c   :  { %571 = vmatpush.msrb.mxu3 %v551_v32  ;;  %597 = vmatpush.msrb.mxu0 %v577_v41 }
 0x49d   :  { %888 = vmatpush.msra.mxu2 %v863_v36 }
 0x49f   :  { %v545_v4 = vpop.xlane.xlu0 %544  ;;  %889 = vmatpush.msra.mxu2 %v862_v37 }
 0x4a0   :  { %1138 = vrcp.f32 %v545_v4 }
 0x4a1   :  { %890 = vmatpush.msra.mxu2 %v861_v38  ;;  %v979_v38 = vld [vmem:[%s1583_s10 + $0x8] sm:$0xff] }
 0x4a6   :  { %v1139_v42 = vpop.eup %1138 }
 0x4a7   :  { %v549_v43 = vmul.f32 %v1139_v42, %v1125_v12 }
 0x4a9   :  { %1075 = vmatmul.msk.f32.vlgmr.msrb.gmra.mxu0 %vm213_vm8, %v549_v43 }
 0x4ae   :  { %v333_v56 = vpop.f32.mrf.mxu0 }
 0x4b2   :  { %v683_v44 = vpop.permute.xlu0 %682 }
 0x4b3   :  { %703 = vmatpush.msra.mxu3 %v683_v44 }
 0x4d0   :  { %v677_v50 = vpop.xlane.xlu2 %676 }
 0x4dd   :  { %v542_v45 = vpop.xlane.xlu0 %541 }
 0x4de   :  { %1140 = vrcp.f32 %v542_v45 }
 0x4e4   :  { %v1141_v46 = vpop.eup %1140 }
 0x4e5   :  { %v674_v47 = vpop.xlane.xlu0 %673  ;;  %v548_v48 = vmul.f32 %v1141_v46, %v1131_v27 }
 0x4e6   :  { %1142 = vrcp.f32 %v674_v47 }
 0x4e7   :  { %1074 = vmatmul.msk.f32.vlgmr.msrb.gmra.mxu3 %vm213_vm8, %v548_v48  ;;  %1144 = vrcp.f32 %v677_v50 }
 0x4e8   :  { %998 = vmatpush.msrb.mxu3 %v993_v5 }
 0x4ec   :  { %v1143_v49 = vpop.eup %1142 }
 0x4ed   :  { %v680_v51 = vmul.f32 %v1143_v49, %v1133_v63  ;;  %v1145_v52 = vpop.eup %1144 }
 0x4ee   :  { %v681_v53 = vmul.f32 %v1145_v52, %v1129_v21 }
 0x4ef   :  { %1080 = vmatmul.msk.f32.vlgmr.msra.gmra.mxu3 %vm213_vm8, %v680_v51  ;;  %v1104_v51 = vld [vmem:[%s1579_s6] ss:$0 sm:$0xff] }
 0x4f8   :  { %v709_v54 = vpop.permute.xlu0 %708 }
 0x4f9   :  { %729 = vmatpush.msra.mxu0 %v709_v54 }
 0x4fa   :  { %1081 = vmatmul.msk.f32.vlgmr.msra.gmra.mxu0 %vm213_vm8, %v681_v53 }
 0x518   :  { %v467_v57 = vpop.f32.mrf.mxu0 }
 0x51e   :  { %v440_v55 = vpop.f32.mrf.mxu3 }
 0x51f   :  { %736 = vrot.lane.b32.xlu1 %v440_v55, %s1212_s27  ;;  %v1105_v55 = vld [vmem:[%s1580_s7] ss:$0 sm:$0xff] }
 0x526   :  { %v599_v59 = vpop.f32.mrf.mxu0 }
 0x56a   :  { %v573_v58 = vpop.f32.mrf.mxu3 }
 0x56b   :  { %744 = vrot.lane.b32.xlu0 %v573_v58, %s1217_s20 }
 0x572   :  { %v705_v60 = vpop.f32.mrf.mxu3 }
 0x573   :  { %738 = vrot.lane.b32.xlu0 %v467_v57, %s1212_s27  ;;  %752 = vrot.lane.b32.xlu1 %v705_v60, %s1218_s21 }
 0x577   :  { %v731_v61 = vpop.f32.mrf.mxu0 }
 0x57b   :  { %754 = vrot.lane.b32.xlu0 %v731_v61, %s1218_s21  ;;  %746 = vrot.lane.b32.xlu1 %v599_v59, %s1217_s20 }
 0x591   :  { %v737_v6 = vpop.permute.xlu1 %736 }
 0x592   :  { %v758_v8 = vsel %vm213_vm8, %v1401_v35, %v737_v6  ;;  %v992_v6 = vld [vmem:[%s1583_s10 + $0x70] sm:$0xff] }
 0x593   :  { %999 = vmatpush.msrb.mxu3 %v992_v6 }
 0x5dd   :  { %v745_v7 = vpop.permute.xlu0 %744 }
 0x5de   :  { %v761_v9 = vsel %vm760_vm9, %v758_v8, %v745_v7  ;;  %v1106_v7 = vld [vmem:[%s1582_s9] ss:$0 sm:$0xff]  ;;  %v991_v8 = vld [vmem:[%s1583_s10 + $0x68] sm:$0xff] }
 0x5df   :  { %1000 = vmatpush.msrb.mxu3 %v991_v8 }
 0x5e5   :  { %v739_v11 = vpop.permute.xlu0 %738  ;;  %v753_v12 = vpop.permute.xlu1 %752 }
 0x5e6   :  { %v764_v13 = vsel %vm763_vm10, %v761_v9, %v753_v12  ;;  %v759_v14 = vsel %vm213_vm8, %v333_v56, %v739_v11  ;;  %v990_v11 = vld [vmem:[%s1583_s10 + $0x60] sm:$0xff] }
 0x5e7   :  { %1082 = vmatmul.msk.f32.vlgmr.msrb.gmra.mxu1 %vm62_vm0, %v764_v13  ;;  %1001 = vmatpush.msrb.mxu3 %v990_v11  ;;  %v989_v13 = vld [vmem:[%s1583_s10 + $0x58] sm:$0xff] }
 0x5e9   :  { %1002 = vmatpush.msrb.mxu3 %v989_v13 }
 0x5ed   :  { %v755_v15 = vpop.permute.xlu0 %754  ;;  %v747_v16 = vpop.permute.xlu1 %746 }
 0x5ee   :  { %v762_v17 = vsel %vm760_vm9, %v759_v14, %v747_v16 }
 0x5ef   :  { %v765_v18 = vsel %vm763_vm10, %v762_v17, %v755_v15  ;;  %v988_v15 = vld [vmem:[%s1583_s10 + $0x50] sm:$0xff]  ;;  %v987_v17 = vld [vmem:[%s1583_s10 + $0x48] sm:$0xff] }
 0x5f0   :  { %1083 = vmatmul.msk.f32.gmra.mxu1 %vm62_vm0, %v765_v18  ;;  %1003 = vmatpush.msrb.mxu3 %v988_v15 }
 0x5f2   :  { %1004 = vmatpush.msrb.mxu3 %v987_v17 }
 0x664   :  { %v797_v20 = vpop.f32.mrf.mxu1 }
 0x665   :  { %v798_v35 = vadd.f32 %v1103_v19, %v797_v20 }
 0x667   :  { %v1456_v21 = vadd.f32 %v798_v35, %v1293_v1 }
 0x669   :  { %v807_v22 = vsel %vm62_vm0, %v1456_v21, 0.0 }
 0x66a   :  { %808 = vadd.xlane.f32.xlu2 %v807_v22 }
 0x66d   :  { %v800_v23 = vpop.f32.mrf.mxu1 }
 0x66e   :  { %v801_v24 = vadd.f32 %v1103_v19, %v800_v23  ;;  %v986_v19 = vld [vmem:[%s1583_s10 + $0x40] sm:$0xff]  ;;  %v985_v23 = vld [vmem:[%s1583_s10 + $0x38] sm:$0xff] }
 0x66f   :  { %1005 = vmatpush.msrb.mxu3 %v986_v19 }
 0x670   :  { %v1461_v25 = vadd.f32 %v801_v24, %v1291_v0 }
 0x671   :  { %1006 = vmatpush.msrb.mxu3 %v985_v23 }
 0x672   :  { %v810_v26 = vsel %vm62_vm0, %v1461_v25, 0.0 }
 0x673   :  { %811 = vadd.xlane.f32.xlu1 %v810_v26  ;;  %v984_v26 = vld [vmem:[%s1583_s10 + $0x30] sm:$0xff] }
 0x674   :  { %1007 = vmatpush.msrb.mxu3 %v984_v26 }
 0x6dd   :  { %v809_v27 = vpop.xlane.xlu2 %808 }
 0x6de   :  { %v813_v28 = vmul.f32 %v809_v27, %v1299_v10 }
 0x6e0   :  { %v815_v63 = vsub.f32 %v1456_v21, %v813_v28  ;;  %v983_v28 = vld [vmem:[%s1583_s10 + $0x28] sm:$0xff] }
 0x6e1   :  { %1008 = vmatpush.msrb.mxu3 %v983_v28 }
 0x6e2   :  { %v817_v1 = vmul.f32 %v815_v63, %v815_v63 }
 0x6e4   :  { %v819_v29 = vsel %vm62_vm0, %v817_v1, 0.0  ;;  %v982_v1 = vld [vmem:[%s1583_s10 + $0x20] sm:$0xff] }
 0x6e5   :  { %820 = vadd.xlane.f32.xlu0 %v819_v29  ;;  %1009 = vmatpush.msrb.mxu3 %v982_v1 }
 0x6e6   :  { %v812_v30 = vpop.xlane.xlu1 %811 }
 0x6e7   :  { %v814_v31 = vmul.f32 %v812_v30, %v1299_v10 }
 0x6e9   :  { %v816_v32 = vsub.f32 %v1461_v25, %v814_v31 }
 0x6eb   :  { %v818_v0 = vmul.f32 %v816_v32, %v816_v32 }
 0x6ed   :  { %v822_v33 = vsel %vm62_vm0, %v818_v0, 0.0 }
 0x6ee   :  { %823 = vadd.xlane.f32.xlu2 %v822_v33  ;;  %v980_v33 = vld [vmem:[%s1583_s10 + $0x10] sm:$0xff] }
 0x758   :  { %v821_v39 = vpop.xlane.xlu0 %820 }
 0x759   :  { %v825_v40 = vmul.f32 %v821_v39, %v1299_v10  ;;  %v978_v39 = vld [vmem:[%s1583_s10] sm:$0xff] }
 0x75b   :  { %v827_v41 = vadd.f32 1e-05, %v825_v40 }
 0x75d   :  { %1146 = vrsqrt.f32 %v827_v41  ;;  %vm835_vm12 = vweird.f32 %v827_v41 }
 0x761   :  { %v824_v4 = vpop.xlane.xlu2 %823 }
 0x762   :  { %v826_v42 = vmul.f32 %v824_v4, %v1299_v10 }
 0x763   :  { %v1147_v43 = vpop.eup %1146 }
 0x764   :  { %v830_v44 = vmul.f32 %v1147_v43, %v827_v41  ;;  %v828_v45 = vadd.f32 1e-05, %v826_v42  ;;  %vm836_vm11 = vweird.f32 %v1147_v43 }
 0x765   :  { %vm837_vm13 = vmor %vm835_vm12, %vm836_vm11 }
 0x766   :  { %v831_v46 = vmul.f32 %v1147_v43, %v830_v44  ;;  %1148 = vrsqrt.f32 %v828_v45  ;;  %vm845_vm15 = vweird.f32 %v828_v45 }
 0x768   :  { %v832_v47 = vmul.f32 0.5, %v831_v46 }
 0x76a   :  { %v833_v48 = vsub.f32 1.5, %v832_v47 }
 0x76c   :  { %v1149_v49 = vpop.eup %1148  ;;  %v834_v50 = vmul.f32 %v1147_v43, %v833_v48 }
 0x76d   :  { %v840_v52 = vmul.f32 %v1149_v49, %v828_v45  ;;  %vm846_vm14 = vweird.f32 %v1149_v49 }
 0x76e   :  { %v838_v53 = vsel %vm837_vm13, %v1147_v43, %v834_v50  ;;  %vm847_vm1 = vmor %vm845_vm15, %vm846_vm14 }
 0x76f   :  { %v849_v54 = vmul.f32 %v838_v53, %v815_v63  ;;  %v841_v10 = vmul.f32 %v1149_v49, %v840_v52 }
 0x771   :  { %v854_v56 = vmul.f32 %v1104_v51, %v849_v54  ;;  %v842_v57 = vmul.f32 0.5, %v841_v10 }
 0x773   :  { %v843_v58 = vsub.f32 1.5, %v842_v57  ;;  %v859_v59 = vadd.f32 %v1105_v55, %v854_v56 }
 0x775   :  { %v844_v60 = vmul.f32 %v1149_v49, %v843_v58  ;;  %1084 = vmatmul.msk.f32.vlgmr.msra.gmra.mxu2 %vm62_vm0, %v859_v59 }
 0x777   :  { %v848_v61 = vsel %vm847_vm1, %v1149_v49, %v844_v60 }
 0x778   :  { %v850_v62 = vmul.f32 %v848_v61, %v816_v32  ;;  %v981_v32 = vld [vmem:[%s1583_s10 + $0x18] sm:$0xff] }
 0x779   :  { %1010 = vmatpush.msrb.mxu3 %v981_v32 }
 0x77a   :  { %v855_v2 = vmul.f32 %v1104_v51, %v850_v62 }
 0x77b   :  { %1011 = vmatpush.msrb.mxu3 %v980_v33 }
 0x77c   :  { %v860_v3 = vadd.f32 %v1105_v55, %v855_v2 }
 0x77d   :  { %1012 = vmatpush.msrb.mxu3 %v979_v38 }
 0x77e   :  { %1085 = vmatmul.msk.f32.gmra.mxu2 %vm62_vm0, %v860_v3 }
 0x77f   :  { %1013 = vmatpush.msrb.mxu3 %v978_v39 }
 0x7f8   :  { %v892_v9 = vpop.f32.mrf.mxu2 }
 0x7f9   :  { %v1508_v12 = vadd.f32 %v1106_v7, %v892_v9 }
 0x7fb   :  { %v1514_v14 = vmul.f32 0.70710677, %v1508_v12  ;;  %v898_v26 = vmul.f32 0.5, %v1508_v12  ;;  %v1107_v12 = vld [vmem:[%s1584_s11] ss:$0 sm:$0xff] }
 0x7fd   :  { %v902_v16 = vand.u32 2147483647, %v1514_v14  ;;  %vm968_vm10 = vcmp.lt.f32.partialorder %v1514_v14, 0.0 }
 0x7ff   :  { %v904_v18 = vmul.f32 0.3275911, %v902_v16  ;;  %v956_v44 = vsub.f32 0.0, %v902_v16 }
 0x801   :  { %v906_v20 = vadd.f32 1.0, %v904_v18  ;;  %v895_v35 = vpop.f32.mrf.mxu2  ;;  %v958_v50 = vmul.f32 %v956_v44, %v902_v16 }
 0x802   :  { %v1526_v22 = vadd.f32 %v1106_v7, %v895_v35 }
 0x803   :  { %1150 = vrcp.f32 %v906_v20  ;;  %v919_v34 = vand.u32 2147483648, %v906_v20  ;;  %v917_v37 = vand.u32 2147483647, %v906_v20  ;;  %vm913_vm3 = vweird.f32 %v906_v20 }
 0x804   :  { %v1532_v24 = vmul.f32 0.70710677, %v1526_v22  ;;  %v960_v56 = vmul.f32 1.442695, %v958_v50 }
 0x805   :  { %v920_v41 = vor.u32 1.1754944e-38, %v919_v34  ;;  %vm918_vm5 = vcmp.eq.f32.partialorder %v917_v37, 8.507059e+37 }
 0x806   :  { %v903_v27 = vand.u32 2147483647, %v1532_v24  ;;  %vm969_vm11 = vcmp.lt.f32.partialorder %v1532_v24, 0.0 }
 0x808   :  { %v905_v63 = vmul.f32 0.3275911, %v903_v27  ;;  %v957_v59 = vsub.f32 0.0, %v903_v27 }
 0x809   :  { %v1151_v29 = vpop.eup %1150 }
 0x80a   :  { %v909_v30 = vmul.f32 %v1151_v29, %v906_v20  ;;  %v907_v31 = vadd.f32 1.0, %v905_v63  ;;  %vm914_vm2 = vweird.f32 %v1151_v29  ;;  %v959_v5 = vmul.f32 %v957_v59, %v903_v27 }
 0x80b   :  { %vm915_vm4 = vmor %vm913_vm3, %vm914_vm2 }
 0x80c   :  { %v910_v0 = vsub.f32 1.0, %v909_v30  ;;  %1152 = vrcp.f32 %v907_v31  ;;  %v934_v49 = vand.u32 2147483648, %v907_v31  ;;  %v932_v52 = vand.u32 2147483647, %v907_v31 }
 0x80d   :  { %vm928_vm7 = vweird.f32 %v907_v31  ;;  %1154 = vpow2.f32 %v960_v56  ;;  %v962_v11 = vmul.f32 1.442695, %v959_v5 }
 0x80e   :  { %v911_v36 = vmul.f32 %v1151_v29, %v910_v0  ;;  %v935_v55 = vor.u32 1.1754944e-38, %v934_v49  ;;  %vm933_vm9 = vcmp.eq.f32.partialorder %v932_v52, 8.507059e+37  ;;  %v899_v0 = vmul.f32 0.5, %v1526_v22 }
 0x80f   :  { %1156 = vpow2.f32 %v962_v11 }
 0x810   :  { %v912_v40 = vadd.f32 %v1151_v29, %v911_v36 }
 0x812   :  { %v1153_v4 = vpop.eup %1152  ;;  %v916_v42 = vsel %vm915_vm4, %v1151_v29, %v912_v40 }
 0x813   :  { %v921_v43 = vsel %vm918_vm5, %v920_v41, %v916_v42  ;;  %v924_v45 = vmul.f32 %v1153_v4, %v907_v31  ;;  %vm929_vm6 = vweird.f32 %v1153_v4  ;;  %v1155_v13 = vpop.eup %1154 }
 0x814   :  { %v938_v46 = vmul.f32 1.0614054, %v921_v43  ;;  %vm930_vm8 = vmor %vm928_vm7, %vm929_vm6 }
 0x815   :  { %v925_v47 = vsub.f32 1.0, %v924_v45  ;;  %v1157_v63 = vpop.eup %1156 }
 0x816   :  { %v940_v48 = vadd.f32 -1.4531521, %v938_v46 }
 0x817   :  { %v926_v51 = vmul.f32 %v1153_v4, %v925_v47 }
 0x818   :  { %v942_v53 = vmul.f32 %v940_v48, %v921_v43 }
 0x819   :  { %v927_v54 = vadd.f32 %v1153_v4, %v926_v51 }
 0x81a   :  { %v944_v10 = vadd.f32 1.4214138, %v942_v53 }
 0x81b   :  { %v931_v57 = vsel %vm930_vm8, %v1153_v4, %v927_v54 }
 0x81c   :  { %v946_v58 = vmul.f32 %v944_v10, %v921_v43  ;;  %v936_v60 = vsel %vm933_vm9, %v935_v55, %v931_v57 }
 0x81d   :  { %v939_v61 = vmul.f32 1.0614054, %v936_v60 }
 0x81e   :  { %v948_v62 = vadd.f32 -0.28449672, %v946_v58 }
 0x81f   :  { %v941_v2 = vadd.f32 -1.4531521, %v939_v61 }
 0x820   :  { %v950_v3 = vmul.f32 %v948_v62, %v921_v43 }
 0x821   :  { %v943_v6 = vmul.f32 %v941_v2, %v936_v60 }
 0x822   :  { %v952_v7 = vadd.f32 0.2548296, %v950_v3 }
 0x823   :  { %v945_v8 = vadd.f32 1.4214138, %v943_v6 }
 0x824   :  { %v954_v9 = vmul.f32 %v952_v7, %v921_v43 }
 0x825   :  { %v947_v15 = vmul.f32 %v945_v8, %v936_v60 }
 0x826   :  { %v964_v16 = vmul.f32 %v1155_v13, %v954_v9 }
 0x827   :  { %v949_v17 = vadd.f32 -0.28449672, %v947_v15 }
 0x828   :  { %v966_v18 = vsub.f32 1.0, %v964_v16 }
 0x829   :  { %v951_v19 = vmul.f32 %v949_v17, %v936_v60 }
 0x82a   :  { %v970_v20 = vsub.f32 0.0, %v966_v18 }
 0x82b   :  { %v953_v35 = vadd.f32 0.2548296, %v951_v19 }
 0x82c   :  { %v972_v23 = vsel %vm968_vm10, %v970_v20, %v966_v18 }
 0x82d   :  { %v974_v27 = vadd.f32 1.0, %v972_v23  ;;  %v955_v28 = vmul.f32 %v953_v35, %v936_v60 }
 0x82f   :  { %v976_v1 = vmul.f32 %v974_v27, %v898_v26  ;;  %v965_v29 = vmul.f32 %v1157_v63, %v955_v28 }
 0x831   :  { %1014 = vmatmul.f32.vlgmr.msrb.gmra.mxu3 %v976_v1  ;;  %v967_v30 = vsub.f32 1.0, %v965_v29 }
 0x833   :  { %v971_v31 = vsub.f32 0.0, %v967_v30 }
 0x835   :  { %v973_v32 = vsel %vm969_vm11, %v971_v31, %v967_v30 }
 0x836   :  { %v975_v33 = vadd.f32 1.0, %v973_v32 }
 0x838   :  { %v977_v34 = vmul.f32 %v975_v33, %v899_v0 }
 0x83a   :  { %1017 = vmatmul.f32.gmra.mxu3 %v977_v34 }
 0x8b4   :  { %v1015_v14 = vpop.f32.mrf.mxu3 }
 0x8b5   :  { %v1016_v36 = vadd.f32 %v1107_v12, %v1015_v14 }
 0x8b7   :  { %v1021_v37 = vadd.f32 %v1016_v36, %v1456_v21 }
 0x8b9   :  { %1023 = vst.msk [vmem:[#allocation5] sm:$0xff] %vm62_vm0, %v1021_v37 }
 0x8bd   :  { %v1018_v38 = vpop.f32.mrf.mxu3 }
 0x8be   :  { %v1019_v22 = vadd.f32 %v1107_v12, %v1018_v38 }
 0x8c0   :  { %v1022_v24 = vadd.f32 %v1019_v22, %v1461_v25 }
 0x8c2   :  { %1024 = vst.msk [vmem:[#allocation5 + $0x8] sm:$0xff] %vm62_vm0, %v1022_v24 }
 0x8c3   :  { %1037 = dma.vmem_to_hbm [thread:$0]  %s1030_s30, 256, %s1032_s13, [#allocation4], %s1211_s26, %s1211_s26, %s1212_s27  }
 0x8c4   :  { %1208 = dma.done.wait [#allocation4], 256  }
 0x8c5   :  { %1209 = vsyncadd [#allocation4], 4294967040 }
 0x8c6   :  { %1042 = vsyncpa [#allocation3], 1 }
 0x8c7   :  { %1043 = vsyncpa [#allocation4], 1 }

</bundles_post_ra>
